<compile_context>
chip_gen: v6e
topology: v6e:2x2x1
jax: 0.10.0
libtpu: 0.0.40
codegen_flags: <defaults>
</compile_context>

<pallas_src>
import functools

import jax
import jax.numpy as jnp
from jax import lax
from jax.experimental import pallas as pl
from jax.experimental.pallas import tpu as pltpu


def sstcn_kernel(num_layers, t_tile, halo, seq_len,
                 x_hbm, w_in_ref, b_in_ref, wd_ref, bd_ref,
                 w1_ref, b1_ref, w_out_ref, b_out_ref,
                 o_ref,
                 xbuf, dma_sem):
    """One (batch, time-tile) step of the single-stage TCN, NCT layout."""
    b = pl.program_id(0)
    t = pl.program_id(1)
    F = w_in_ref.shape[0]
    W = t_tile + 2 * halo

    # ---- fetch this tile's halo window of x (exact-sized manual DMA) --------
    start = pl.multiple_of(t * t_tile, 128)
    cp = pltpu.make_async_copy(x_hbm.at[b, :, pl.ds(start, W)], xbuf, dma_sem.at[0])
    cp.start()
    # TODO(synk): cross-step double-buffering of this window fetch would hide it
    # under the previous tile's compute, but requires the t axis to be
    # "arbitrary"; kept single-shot so both grid axes stay megacore-"parallel".
    cp.wait()

    x = xbuf[...]                                               # (dim, W) bf16

    # input 1x1 conv: (F, dim) @ (dim, W) on the MXU, f32 accumulation.
    h = jnp.dot(w_in_ref[...], x, preferred_element_type=jnp.float32) + b_in_ref[...]

    # Hoisted loop invariants (JAX does not CSE broadcast_in_dim -> build once):
    # lane-position iota and this tile's absolute time offset.
    # Window column j  <->  true time  (off + j - halo).
    col = lax.broadcasted_iota(jnp.int32, (F, W), 1)
    off = t * t_tile

    # dilated residual layers (num_layers is a Python constant -> unrolled)
    for i in range(num_layers):
        d = 2 ** i
        # One fused matmul for all 3 taps: (3F, F) @ (F, W) -> (3F, W).
        r = jnp.dot(wd_ref[i], h.astype(jnp.bfloat16),
                    preferred_element_type=jnp.float32)
        center = r[F:2 * F, :]                                  # tap k=1: h[:, tau]
        # tap k=0 uses h[:, tau-d]: shift its output panel right along time on
        # the XLU, then zero where the neighbour falls before the true sequence
        # start -- this IS Conv1d(padding=d)'s zero padding at the left edge.
        left = jnp.where(col >= halo + d - off,
                         pltpu.roll(r[:F, :], shift=d, axis=1), 0.0)
        # tap k=2 uses h[:, tau+d]: shift left; zero where the neighbour falls
        # at/after the true sequence end.
        right = jnp.where(col < seq_len + halo - d - off,
                          pltpu.roll(r[2 * F:, :], shift=W - d, axis=1), 0.0)
        conv = left + center + right + bd_ref[i]
        a = jnp.maximum(conv, 0.0)                              # ReLU, f32 on VPU
        out = jnp.dot(w1_ref[i], a.astype(jnp.bfloat16),
                      preferred_element_type=jnp.float32) + b1_ref[i]
        # TODO(synk): nn.Dropout() is identity in eval mode; training-mode stochastic dropout not implemented.
        h = h + out                                             # residual, f32

    # output 1x1 conv on the central t_tile columns only (halo discarded).
    hc = h[:, halo:halo + t_tile].astype(jnp.bfloat16)
    o_ref[0] = (jnp.dot(w_out_ref[...], hc, preferred_element_type=jnp.float32)
                + b_out_ref[...])


def single_stage_model(x, params, num_layers, t_tile=2048):
    """x: (B, dim, T) float32 (PyTorch Conv1d NCT layout). Returns (B, C, T) f32.

    For production sizes pick t_tile (multiple of 128, 2-8K) a few times larger
    than the halo 2^L - 1 so the halo recompute overhead stays small.
    """
    B, dim, T = x.shape
    F_ = params["w_in"].shape[0]
    C = params["w_out"].shape[0]
    L = num_layers

    # Receptive-field half-width of the WHOLE stack is 2^L - 1; round up to a
    # multiple of 128 so all lane-dim arrays in the kernel are 128-aligned.
    halo = ((2 ** L - 1) + 127) // 128 * 128
    t_tile = max(t_tile // 128, 1) * 128
    t_tile = min(t_tile, ((T + 127) // 128) * 128)
    nt = pl.cdiv(T, t_tile)
    t_pad = nt * t_tile
    W = t_tile + 2 * halo

    # bf16 x halves the dominant HBM read; zero-pad by the halo on both sides
    # (plus round-up) so tile t's window is x_pad[:, :, t*t_tile : t*t_tile + W].
    x_pad = jnp.pad(x.astype(jnp.bfloat16),
                    ((0, 0), (0, 0), (halo, (t_pad - T) + halo)))

    bf = jnp.bfloat16
    w_in, wd, w1, w_out = (params[k].astype(bf) for k in ("w_in", "wd", "w1", "w_out"))
    b_in, bd, b1, b_out = params["b_in"], params["bd"], params["b1"], params["b_out"]

    flops = 2 * B * nt * (W * (dim * F_ + L * 4 * F_ * F_) + t_tile * F_ * C)
    bytes_accessed = int(2 * B * nt * dim * W + 4 * B * C * t_pad
                         + 2 * (w_in.size + wd.size + w1.size + w_out.size)
                         + 4 * (b_in.size + bd.size + b1.size + b_out.size))

    # Explicit VMEM budget (v7x: 64 MiB/TC): bf16 halo window + f32 activations
    # (h, 3-tap panels, conv/relu temporaries) + double-buffered output block +
    # double-buffered weights, with 2x headroom.
    vmem_est = (dim * W * 2 + 12 * F_ * W * 4 + 4 * C * t_tile * 4
                + 4 * (w_in.size + wd.size + w1.size + w_out.size)
                + 8 * (b_in.size + bd.size + b1.size + b_out.size))
    vmem_limit = int(min(max(32 * 2 ** 20, 2 * vmem_est), 64 * 2 ** 20))

    kernel = functools.partial(sstcn_kernel, L, t_tile, halo, T)
    out = pl.pallas_call(
        kernel,
        out_shape=jax.ShapeDtypeStruct((B, C, t_pad), jnp.float32),
        grid_spec=pltpu.PrefetchScalarGridSpec(
            num_scalar_prefetch=0,
            grid=(B, nt),
            in_specs=[
                pl.BlockSpec(memory_space=pl.ANY),                      # x (HBM; manual halo DMA)
                # TODO(synk): mark the constant-index weight specs single-buffered
                # (pipeline_mode=pl.Buffered(1)) to reclaim the unused second buffer.
                pl.BlockSpec((F_, dim), lambda b, t: (0, 0)),           # w_in  (Cout, Cin) bf16
                pl.BlockSpec((F_, 1), lambda b, t: (0, 0)),             # b_in  f32
                pl.BlockSpec((L, 3 * F_, F_), lambda b, t: (0, 0, 0)),  # wd: 3 taps stacked on Cout
                pl.BlockSpec((L, F_, 1), lambda b, t: (0, 0, 0)),       # bd
                pl.BlockSpec((L, F_, F_), lambda b, t: (0, 0, 0)),      # w1 (per-layer 1x1)
                pl.BlockSpec((L, F_, 1), lambda b, t: (0, 0, 0)),       # b1
                pl.BlockSpec((C, F_), lambda b, t: (0, 0)),             # w_out
                pl.BlockSpec((C, 1), lambda b, t: (0, 0)),              # b_out
            ],
            out_specs=pl.BlockSpec((1, C, t_tile), lambda b, t: (b, 0, t)),
            scratch_shapes=[
                pltpu.VMEM((dim, W), jnp.bfloat16),                     # x halo window
                pltpu.SemaphoreType.DMA((1,)),
            ],
        ),
        compiler_params=pltpu.CompilerParams(
            dimension_semantics=("parallel", "parallel"),
            vmem_limit_bytes=vmem_limit),
        cost_estimate=pl.CostEstimate(flops=flops, transcendentals=0,
                                      bytes_accessed=bytes_accessed),
    )(x_pad, w_in, b_in, wd, bd, w1, b1, w_out, b_out)
    return out[:, :, :T]


def reference_forward(x, params, num_layers):
    """Plain-JAX reference mirroring the PyTorch module in eval mode (NCT layout).

    Uses the same mixed precision as the kernel (bf16 matmul operands, f32
    accumulation / bias / residual / ReLU) and the original shift-the-input conv
    formulation, independently validating the tiled halo + roll/mask rewrite.
    """
    bf = jnp.bfloat16

    def mm(w, a):
        return jnp.einsum("oi,bit->bot", w.astype(bf), a.astype(bf),
                          preferred_element_type=jnp.float32)

    B, _, T = x.shape
    F_ = params["w_in"].shape[0]
    h = mm(params["w_in"], x) + params["b_in"]
    for i in range(num_layers):
        d = 2 ** i
        wd = params["wd"][i]
        w0, w1c, w2 = wd[:F_], wd[F_:2 * F_], wd[2 * F_:]
        if d < T:
            pad = jnp.zeros((B, F_, d), h.dtype)
            h_prev = jnp.concatenate([pad, h[:, :, :T - d]], axis=2)   # h[:, :, t-d]
            h_next = jnp.concatenate([h[:, :, d:], pad], axis=2)       # h[:, :, t+d]
        else:
            h_prev = jnp.zeros_like(h)
            h_next = jnp.zeros_like(h)
        conv = mm(w0, h_prev) + mm(w1c, h) + mm(w2, h_next) + params["bd"][i]
        a = jnp.maximum(conv, 0.0)
        h = h + mm(params["w1"][i], a) + params["b1"][i]
    return mm(params["w_out"], h) + params["b_out"]


def init_params(key, num_layers, num_f_maps, dim, num_classes):
    """Deterministic synthetic weights in native Conv1d (Cout, Cin) orientation."""
    ks = jax.random.split(key, 8)
    s = 0.1
    return {
        "w_in":  s * jax.random.normal(ks[0], (num_f_maps, dim), jnp.float32),
        "b_in":  s * jax.random.normal(ks[1], (num_f_maps, 1), jnp.float32),
        # Dilated-conv weights: PyTorch (Cout, Cin, 3) with the 3 taps stacked along
        # Cout -> (3F, F); wd[i, k*F:(k+1)*F, :] == torch weight[:, :, k].
        "wd":    s * jax.random.normal(ks[2], (num_layers, 3 * num_f_maps, num_f_maps), jnp.float32),
        "bd":    s * jax.random.normal(ks[3], (num_layers, num_f_maps, 1), jnp.float32),
        "w1":    s * jax.random.normal(ks[4], (num_layers, num_f_maps, num_f_maps), jnp.float32),
        "b1":    s * jax.random.normal(ks[5], (num_layers, num_f_maps, 1), jnp.float32),
        "w_out": s * jax.random.normal(ks[6], (num_classes, num_f_maps), jnp.float32),
        "b_out": s * jax.random.normal(ks[7], (num_classes, 1), jnp.float32),
    }


if __name__ == "__main__":
    # SingleStageModel(num_layers=3, num_f_maps=32, dim=4, num_classes=6)
    num_layers, num_f_maps, dim, num_classes = 3, 32, 4, 6
    # T = 300 with t_tile = 128 exercises 3 time tiles, both sequence-boundary
    # halos, interior-tile halos with real data, and the round-up slice.
    B, T = 2, 300

    key = jax.random.PRNGKey(0)
    k_x, k_p = jax.random.split(key)
    x = jax.random.normal(k_x, (B, dim, T), jnp.float32)      # PyTorch NCT layout
    params = init_params(k_p, num_layers, num_f_maps, dim, num_classes)

    out = single_stage_model(x, params, num_layers, t_tile=128)
    out = jax.block_until_ready(out)

    ref = reference_forward(x, params, num_layers)
    assert out.shape == (B, num_classes, T)
    assert jnp.allclose(out, ref, atol=2e-2, rtol=2e-2), "Pallas kernel mismatch vs reference"

    print("KERNEL_OK")
</pallas_src>

<mosaic_0001>
module attributes {stable_mosaic.version = 11 : i64} {
  func.func @sstcn_kernel(%arg0: i32, %arg1: i32, %arg2: memref<2x4x640xbf16, #tpu.memory_space<any>>, %arg3: memref<32x4xbf16, #tpu.memory_space<vmem>>, %arg4: memref<32x1xf32, #tpu.memory_space<vmem>>, %arg5: memref<3x96x32xbf16, #tpu.memory_space<vmem>>, %arg6: memref<3x32x1xf32, #tpu.memory_space<vmem>>, %arg7: memref<3x32x32xbf16, #tpu.memory_space<vmem>>, %arg8: memref<3x32x1xf32, #tpu.memory_space<vmem>>, %arg9: memref<6x32xbf16, #tpu.memory_space<vmem>>, %arg10: memref<6x1xf32, #tpu.memory_space<vmem>>, %arg11: memref<1x6x128xf32, #tpu.memory_space<vmem>>, %arg12: memref<4x384xbf16, #tpu.memory_space<vmem>>, %arg13: memref<1x!tpu.dma_semaphore, #tpu.memory_space<semaphore_mem>>) attributes {dimension_semantics = [#tpu.dimension_semantics<parallel>, #tpu.dimension_semantics<parallel>], iteration_bounds = array<i64: 2, 3>, scalar_prefetch = 0 : i64, scratch_operands = 2 : i64, tpu.core_type = #tpu.core_type<tc>, window_params = [{}, {pipeline_mode = #tpu.pipeline_mode<synchronous>, transform_indices = @transform_1, window_bounds = array<i64: 32, 4>}, {pipeline_mode = #tpu.pipeline_mode<synchronous>, transform_indices = @transform_2, window_bounds = array<i64: 32, 1>}, {pipeline_mode = #tpu.pipeline_mode<synchronous>, transform_indices = @transform_3, window_bounds = array<i64: 3, 96, 32>}, {pipeline_mode = #tpu.pipeline_mode<synchronous>, transform_indices = @transform_4, window_bounds = array<i64: 3, 32, 1>}, {pipeline_mode = #tpu.pipeline_mode<synchronous>, transform_indices = @transform_5, window_bounds = array<i64: 3, 32, 32>}, {pipeline_mode = #tpu.pipeline_mode<synchronous>, transform_indices = @transform_6, window_bounds = array<i64: 3, 32, 1>}, {pipeline_mode = #tpu.pipeline_mode<synchronous>, transform_indices = @transform_7, window_bounds = array<i64: 6, 32>}, {pipeline_mode = #tpu.pipeline_mode<synchronous>, transform_indices = @transform_8, window_bounds = array<i64: 6, 1>}, {transform_indices = @transform_9, window_bounds = array<i64: 1, 6, 128>}]} {
    %c128_i32 = arith.constant 128 : i32
    %0 = arith.muli %arg1, %c128_i32 : i32
    %1 = tpu.assume_multiple %0, 128 : i32
    %c0_i32 = arith.constant 0 : i32
    %c0_i32_0 = arith.constant 0 : i32
    %2 = tpu.memref_slice %arg2[%arg0, %c0_i32_0, %1] : memref<2x4x640xbf16, #tpu.memory_space<any>> -> memref<1x4x384xbf16, #tpu.memory_space<any>>
    %3 = tpu.memref_squeeze %2 : memref<1x4x384xbf16, #tpu.memory_space<any>> -> memref<4x384xbf16, #tpu.memory_space<any>>
    %4 = tpu.memref_slice %arg13[%c0_i32] : memref<1x!tpu.dma_semaphore, #tpu.memory_space<semaphore_mem>> -> memref<1x!tpu.dma_semaphore, #tpu.memory_space<semaphore_mem>>
    %5 = tpu.memref_squeeze %4 : memref<1x!tpu.dma_semaphore, #tpu.memory_space<semaphore_mem>> -> memref<!tpu.dma_semaphore, #tpu.memory_space<semaphore_mem>>
    tpu.enqueue_dma source(%3 : memref<4x384xbf16, #tpu.memory_space<any>>) target(%arg12 : memref<4x384xbf16, #tpu.memory_space<vmem>>) target_semaphore(%5 : memref<!tpu.dma_semaphore, #tpu.memory_space<semaphore_mem>>)
    %c0_i32_1 = arith.constant 0 : i32
    %c0_i32_2 = arith.constant 0 : i32
    %6 = tpu.memref_slice %arg2[%arg0, %c0_i32_2, %1] : memref<2x4x640xbf16, #tpu.memory_space<any>> -> memref<1x4x384xbf16, #tpu.memory_space<any>>
    %7 = tpu.memref_squeeze %6 : memref<1x4x384xbf16, #tpu.memory_space<any>> -> memref<4x384xbf16, #tpu.memory_space<any>>
    %8 = tpu.memref_slice %arg13[%c0_i32_1] : memref<1x!tpu.dma_semaphore, #tpu.memory_space<semaphore_mem>> -> memref<1x!tpu.dma_semaphore, #tpu.memory_space<semaphore_mem>>
    %9 = tpu.memref_squeeze %8 : memref<1x!tpu.dma_semaphore, #tpu.memory_space<semaphore_mem>> -> memref<!tpu.dma_semaphore, #tpu.memory_space<semaphore_mem>>
    tpu.wait_dma2 semaphore(%9 : memref<!tpu.dma_semaphore, #tpu.memory_space<semaphore_mem>>) src(%7 : memref<4x384xbf16, #tpu.memory_space<any>>) dst(%arg12 : memref<4x384xbf16, #tpu.memory_space<vmem>>)
    %c0 = arith.constant 0 : index
    %c0_3 = arith.constant 0 : index
    %10 = vector.load %arg12[%c0, %c0_3] : memref<4x384xbf16, #tpu.memory_space<vmem>>, vector<4x384xbf16>
    %c0_4 = arith.constant 0 : index
    %c0_5 = arith.constant 0 : index
    %11 = vector.load %arg3[%c0_4, %c0_5] : memref<32x4xbf16, #tpu.memory_space<vmem>>, vector<32x4xbf16>
    %cst = arith.constant dense<0.000000e+00> : vector<32x384xf32>
    %12 = tpu.matmul %11, %10, %cst {dimension_numbers = #tpu.dot_dimension_numbers<[1], [0], [0], [1], [0, 0, 1, 1], [], []>} : vector<32x4xbf16>, vector<4x384xbf16>, vector<32x384xf32> -> vector<32x384xf32>
    %c0_6 = arith.constant 0 : index
    %c0_7 = arith.constant 0 : index
    %13 = vector.load %arg4[%c0_6, %c0_7] : memref<32x1xf32, #tpu.memory_space<vmem>>, vector<32x1xf32>
    %14 = vector.broadcast %13 : vector<32x1xf32> to vector<32x384xf32>
    %15 = arith.addf %12, %14 : vector<32x384xf32>
    %16 = tpu.iota {dimensions = array<i32: 1>} : vector<32x384xi32>
    %c128_i32_8 = arith.constant 128 : i32
    %17 = arith.muli %arg1, %c128_i32_8 : i32
    %c0_9 = arith.constant 0 : index
    %c0_10 = arith.constant 0 : index
    %c0_11 = arith.constant 0 : index
    %18 = vector.load %arg5[%c0_9, %c0_10, %c0_11] : memref<3x96x32xbf16, #tpu.memory_space<vmem>>, vector<1x96x32xbf16>
    %19 = vector.shape_cast %18 : vector<1x96x32xbf16> to vector<96x32xbf16>
    %20 = arith.truncf %15 : vector<32x384xf32> to vector<32x384xbf16>
    %cst_12 = arith.constant dense<0.000000e+00> : vector<96x384xf32>
    %21 = tpu.matmul %19, %20, %cst_12 {dimension_numbers = #tpu.dot_dimension_numbers<[1], [0], [0], [1], [0, 0, 1, 1], [], []>} : vector<96x32xbf16>, vector<32x384xbf16>, vector<96x384xf32> -> vector<96x384xf32>
    %22 = vector.extract_strided_slice %21 {offsets = [32, 0], sizes = [32, 384], strides = [1, 1]} : vector<96x384xf32> to vector<32x384xf32>
    %c129_i32 = arith.constant 129 : i32
    %23 = arith.subi %c129_i32, %17 : i32
    %24 = vector.broadcast %23 : i32 to vector<32x384xi32>
    %25 = arith.cmpi sge, %16, %24 : vector<32x384xi32>
    %26 = vector.extract_strided_slice %21 {offsets = [0, 0], sizes = [32, 384], strides = [1, 1]} : vector<96x384xf32> to vector<32x384xf32>
    %c1_i32 = arith.constant 1 : i32
    %27 = tpu.dynamic_rotate %26 by %c1_i32 dim 1 : vector<32x384xf32>, i32 -> vector<32x384xf32>
    %cst_13 = arith.constant 0.000000e+00 : f32
    %28 = vector.broadcast %cst_13 : f32 to vector<32x384xf32>
    %29 = arith.select %25, %27, %28 : vector<32x384xi1>, vector<32x384xf32>
    %c427_i32 = arith.constant 427 : i32
    %30 = arith.subi %c427_i32, %17 : i32
    %31 = vector.broadcast %30 : i32 to vector<32x384xi32>
    %32 = arith.cmpi slt, %16, %31 : vector<32x384xi32>
    %33 = vector.extract_strided_slice %21 {offsets = [64, 0], sizes = [32, 384], strides = [1, 1]} : vector<96x384xf32> to vector<32x384xf32>
    %c383_i32 = arith.constant 383 : i32
    %34 = tpu.dynamic_rotate %33 by %c383_i32 dim 1 : vector<32x384xf32>, i32 -> vector<32x384xf32>
    %cst_14 = arith.constant 0.000000e+00 : f32
    %35 = vector.broadcast %cst_14 : f32 to vector<32x384xf32>
    %36 = arith.select %32, %34, %35 : vector<32x384xi1>, vector<32x384xf32>
    %37 = arith.addf %29, %22 : vector<32x384xf32>
    %38 = arith.addf %37, %36 : vector<32x384xf32>
    %c0_15 = arith.constant 0 : index
    %c0_16 = arith.constant 0 : index
    %c0_17 = arith.constant 0 : index
    %39 = vector.load %arg6[%c0_15, %c0_16, %c0_17] : memref<3x32x1xf32, #tpu.memory_space<vmem>>, vector<1x32x1xf32>
    %40 = vector.shape_cast %39 : vector<1x32x1xf32> to vector<32x1xf32>
    %41 = vector.broadcast %40 : vector<32x1xf32> to vector<32x384xf32>
    %42 = arith.addf %38, %41 : vector<32x384xf32>
    %cst_18 = arith.constant 0.000000e+00 : f32
    %43 = vector.broadcast %cst_18 : f32 to vector<32x384xf32>
    %44 = arith.maximumf %42, %43 : vector<32x384xf32>
    %c0_19 = arith.constant 0 : index
    %c0_20 = arith.constant 0 : index
    %c0_21 = arith.constant 0 : index
    %45 = vector.load %arg7[%c0_19, %c0_20, %c0_21] : memref<3x32x32xbf16, #tpu.memory_space<vmem>>, vector<1x32x32xbf16>
    %46 = vector.shape_cast %45 : vector<1x32x32xbf16> to vector<32x32xbf16>
    %47 = arith.truncf %44 : vector<32x384xf32> to vector<32x384xbf16>
    %cst_22 = arith.constant dense<0.000000e+00> : vector<32x384xf32>
    %48 = tpu.matmul %46, %47, %cst_22 {dimension_numbers = #tpu.dot_dimension_numbers<[1], [0], [0], [1], [0, 0, 1, 1], [], []>} : vector<32x32xbf16>, vector<32x384xbf16>, vector<32x384xf32> -> vector<32x384xf32>
    %c0_23 = arith.constant 0 : index
    %c0_24 = arith.constant 0 : index
    %c0_25 = arith.constant 0 : index
    %49 = vector.load %arg8[%c0_23, %c0_24, %c0_25] : memref<3x32x1xf32, #tpu.memory_space<vmem>>, vector<1x32x1xf32>
    %50 = vector.shape_cast %49 : vector<1x32x1xf32> to vector<32x1xf32>
    %51 = vector.broadcast %50 : vector<32x1xf32> to vector<32x384xf32>
    %52 = arith.addf %48, %51 : vector<32x384xf32>
    %53 = arith.addf %15, %52 : vector<32x384xf32>
    %c1 = arith.constant 1 : index
    %c0_26 = arith.constant 0 : index
    %c0_27 = arith.constant 0 : index
    %54 = vector.load %arg5[%c1, %c0_26, %c0_27] : memref<3x96x32xbf16, #tpu.memory_space<vmem>>, vector<1x96x32xbf16>
    %55 = vector.shape_cast %54 : vector<1x96x32xbf16> to vector<96x32xbf16>
    %56 = arith.truncf %53 : vector<32x384xf32> to vector<32x384xbf16>
    %cst_28 = arith.constant dense<0.000000e+00> : vector<96x384xf32>
    %57 = tpu.matmul %55, %56, %cst_28 {dimension_numbers = #tpu.dot_dimension_numbers<[1], [0], [0], [1], [0, 0, 1, 1], [], []>} : vector<96x32xbf16>, vector<32x384xbf16>, vector<96x384xf32> -> vector<96x384xf32>
    %58 = vector.extract_strided_slice %57 {offsets = [32, 0], sizes = [32, 384], strides = [1, 1]} : vector<96x384xf32> to vector<32x384xf32>
    %c130_i32 = arith.constant 130 : i32
    %59 = arith.subi %c130_i32, %17 : i32
    %60 = vector.broadcast %59 : i32 to vector<32x384xi32>
    %61 = arith.cmpi sge, %16, %60 : vector<32x384xi32>
    %62 = vector.extract_strided_slice %57 {offsets = [0, 0], sizes = [32, 384], strides = [1, 1]} : vector<96x384xf32> to vector<32x384xf32>
    %c2_i32 = arith.constant 2 : i32
    %63 = tpu.dynamic_rotate %62 by %c2_i32 dim 1 : vector<32x384xf32>, i32 -> vector<32x384xf32>
    %cst_29 = arith.constant 0.000000e+00 : f32
    %64 = vector.broadcast %cst_29 : f32 to vector<32x384xf32>
    %65 = arith.select %61, %63, %64 : vector<32x384xi1>, vector<32x384xf32>
    %c426_i32 = arith.constant 426 : i32
    %66 = arith.subi %c426_i32, %17 : i32
    %67 = vector.broadcast %66 : i32 to vector<32x384xi32>
    %68 = arith.cmpi slt, %16, %67 : vector<32x384xi32>
    %69 = vector.extract_strided_slice %57 {offsets = [64, 0], sizes = [32, 384], strides = [1, 1]} : vector<96x384xf32> to vector<32x384xf32>
    %c382_i32 = arith.constant 382 : i32
    %70 = tpu.dynamic_rotate %69 by %c382_i32 dim 1 : vector<32x384xf32>, i32 -> vector<32x384xf32>
    %cst_30 = arith.constant 0.000000e+00 : f32
    %71 = vector.broadcast %cst_30 : f32 to vector<32x384xf32>
    %72 = arith.select %68, %70, %71 : vector<32x384xi1>, vector<32x384xf32>
    %73 = arith.addf %65, %58 : vector<32x384xf32>
    %74 = arith.addf %73, %72 : vector<32x384xf32>
    %c1_31 = arith.constant 1 : index
    %c0_32 = arith.constant 0 : index
    %c0_33 = arith.constant 0 : index
    %75 = vector.load %arg6[%c1_31, %c0_32, %c0_33] : memref<3x32x1xf32, #tpu.memory_space<vmem>>, vector<1x32x1xf32>
    %76 = vector.shape_cast %75 : vector<1x32x1xf32> to vector<32x1xf32>
    %77 = vector.broadcast %76 : vector<32x1xf32> to vector<32x384xf32>
    %78 = arith.addf %74, %77 : vector<32x384xf32>
    %cst_34 = arith.constant 0.000000e+00 : f32
    %79 = vector.broadcast %cst_34 : f32 to vector<32x384xf32>
    %80 = arith.maximumf %78, %79 : vector<32x384xf32>
    %c1_35 = arith.constant 1 : index
    %c0_36 = arith.constant 0 : index
    %c0_37 = arith.constant 0 : index
    %81 = vector.load %arg7[%c1_35, %c0_36, %c0_37] : memref<3x32x32xbf16, #tpu.memory_space<vmem>>, vector<1x32x32xbf16>
    %82 = vector.shape_cast %81 : vector<1x32x32xbf16> to vector<32x32xbf16>
    %83 = arith.truncf %80 : vector<32x384xf32> to vector<32x384xbf16>
    %cst_38 = arith.constant dense<0.000000e+00> : vector<32x384xf32>
    %84 = tpu.matmul %82, %83, %cst_38 {dimension_numbers = #tpu.dot_dimension_numbers<[1], [0], [0], [1], [0, 0, 1, 1], [], []>} : vector<32x32xbf16>, vector<32x384xbf16>, vector<32x384xf32> -> vector<32x384xf32>
    %c1_39 = arith.constant 1 : index
    %c0_40 = arith.constant 0 : index
    %c0_41 = arith.constant 0 : index
    %85 = vector.load %arg8[%c1_39, %c0_40, %c0_41] : memref<3x32x1xf32, #tpu.memory_space<vmem>>, vector<1x32x1xf32>
    %86 = vector.shape_cast %85 : vector<1x32x1xf32> to vector<32x1xf32>
    %87 = vector.broadcast %86 : vector<32x1xf32> to vector<32x384xf32>
    %88 = arith.addf %84, %87 : vector<32x384xf32>
    %89 = arith.addf %53, %88 : vector<32x384xf32>
    %c2 = arith.constant 2 : index
    %c0_42 = arith.constant 0 : index
    %c0_43 = arith.constant 0 : index
    %90 = vector.load %arg5[%c2, %c0_42, %c0_43] : memref<3x96x32xbf16, #tpu.memory_space<vmem>>, vector<1x96x32xbf16>
    %91 = vector.shape_cast %90 : vector<1x96x32xbf16> to vector<96x32xbf16>
    %92 = arith.truncf %89 : vector<32x384xf32> to vector<32x384xbf16>
    %cst_44 = arith.constant dense<0.000000e+00> : vector<96x384xf32>
    %93 = tpu.matmul %91, %92, %cst_44 {dimension_numbers = #tpu.dot_dimension_numbers<[1], [0], [0], [1], [0, 0, 1, 1], [], []>} : vector<96x32xbf16>, vector<32x384xbf16>, vector<96x384xf32> -> vector<96x384xf32>
    %94 = vector.extract_strided_slice %93 {offsets = [32, 0], sizes = [32, 384], strides = [1, 1]} : vector<96x384xf32> to vector<32x384xf32>
    %c132_i32 = arith.constant 132 : i32
    %95 = arith.subi %c132_i32, %17 : i32
    %96 = vector.broadcast %95 : i32 to vector<32x384xi32>
    %97 = arith.cmpi sge, %16, %96 : vector<32x384xi32>
    %98 = vector.extract_strided_slice %93 {offsets = [0, 0], sizes = [32, 384], strides = [1, 1]} : vector<96x384xf32> to vector<32x384xf32>
    %c4_i32 = arith.constant 4 : i32
    %99 = tpu.dynamic_rotate %98 by %c4_i32 dim 1 : vector<32x384xf32>, i32 -> vector<32x384xf32>
    %cst_45 = arith.constant 0.000000e+00 : f32
    %100 = vector.broadcast %cst_45 : f32 to vector<32x384xf32>
    %101 = arith.select %97, %99, %100 : vector<32x384xi1>, vector<32x384xf32>
    %c424_i32 = arith.constant 424 : i32
    %102 = arith.subi %c424_i32, %17 : i32
    %103 = vector.broadcast %102 : i32 to vector<32x384xi32>
    %104 = arith.cmpi slt, %16, %103 : vector<32x384xi32>
    %105 = vector.extract_strided_slice %93 {offsets = [64, 0], sizes = [32, 384], strides = [1, 1]} : vector<96x384xf32> to vector<32x384xf32>
    %c380_i32 = arith.constant 380 : i32
    %106 = tpu.dynamic_rotate %105 by %c380_i32 dim 1 : vector<32x384xf32>, i32 -> vector<32x384xf32>
    %cst_46 = arith.constant 0.000000e+00 : f32
    %107 = vector.broadcast %cst_46 : f32 to vector<32x384xf32>
    %108 = arith.select %104, %106, %107 : vector<32x384xi1>, vector<32x384xf32>
    %109 = arith.addf %101, %94 : vector<32x384xf32>
    %110 = arith.addf %109, %108 : vector<32x384xf32>
    %c2_47 = arith.constant 2 : index
    %c0_48 = arith.constant 0 : index
    %c0_49 = arith.constant 0 : index
    %111 = vector.load %arg6[%c2_47, %c0_48, %c0_49] : memref<3x32x1xf32, #tpu.memory_space<vmem>>, vector<1x32x1xf32>
    %112 = vector.shape_cast %111 : vector<1x32x1xf32> to vector<32x1xf32>
    %113 = vector.broadcast %112 : vector<32x1xf32> to vector<32x384xf32>
    %114 = arith.addf %110, %113 : vector<32x384xf32>
    %cst_50 = arith.constant 0.000000e+00 : f32
    %115 = vector.broadcast %cst_50 : f32 to vector<32x384xf32>
    %116 = arith.maximumf %114, %115 : vector<32x384xf32>
    %c2_51 = arith.constant 2 : index
    %c0_52 = arith.constant 0 : index
    %c0_53 = arith.constant 0 : index
    %117 = vector.load %arg7[%c2_51, %c0_52, %c0_53] : memref<3x32x32xbf16, #tpu.memory_space<vmem>>, vector<1x32x32xbf16>
    %118 = vector.shape_cast %117 : vector<1x32x32xbf16> to vector<32x32xbf16>
    %119 = arith.truncf %116 : vector<32x384xf32> to vector<32x384xbf16>
    %cst_54 = arith.constant dense<0.000000e+00> : vector<32x384xf32>
    %120 = tpu.matmul %118, %119, %cst_54 {dimension_numbers = #tpu.dot_dimension_numbers<[1], [0], [0], [1], [0, 0, 1, 1], [], []>} : vector<32x32xbf16>, vector<32x384xbf16>, vector<32x384xf32> -> vector<32x384xf32>
    %c2_55 = arith.constant 2 : index
    %c0_56 = arith.constant 0 : index
    %c0_57 = arith.constant 0 : index
    %121 = vector.load %arg8[%c2_55, %c0_56, %c0_57] : memref<3x32x1xf32, #tpu.memory_space<vmem>>, vector<1x32x1xf32>
    %122 = vector.shape_cast %121 : vector<1x32x1xf32> to vector<32x1xf32>
    %123 = vector.broadcast %122 : vector<32x1xf32> to vector<32x384xf32>
    %124 = arith.addf %120, %123 : vector<32x384xf32>
    %125 = arith.addf %89, %124 : vector<32x384xf32>
    %126 = vector.extract_strided_slice %125 {offsets = [0, 128], sizes = [32, 128], strides = [1, 1]} : vector<32x384xf32> to vector<32x128xf32>
    %127 = arith.truncf %126 : vector<32x128xf32> to vector<32x128xbf16>
    %c0_58 = arith.constant 0 : index
    %c0_59 = arith.constant 0 : index
    %128 = vector.load %arg9[%c0_58, %c0_59] : memref<6x32xbf16, #tpu.memory_space<vmem>>, vector<6x32xbf16>
    %cst_60 = arith.constant dense<0.000000e+00> : vector<6x128xf32>
    %129 = tpu.matmul %128, %127, %cst_60 {dimension_numbers = #tpu.dot_dimension_numbers<[1], [0], [0], [1], [0, 0, 1, 1], [], []>} : vector<6x32xbf16>, vector<32x128xbf16>, vector<6x128xf32> -> vector<6x128xf32>
    %c0_61 = arith.constant 0 : index
    %c0_62 = arith.constant 0 : index
    %130 = vector.load %arg10[%c0_61, %c0_62] : memref<6x1xf32, #tpu.memory_space<vmem>>, vector<6x1xf32>
    %131 = vector.broadcast %130 : vector<6x1xf32> to vector<6x128xf32>
    %132 = arith.addf %129, %131 : vector<6x128xf32>
    %c0_63 = arith.constant 0 : index
    %c0_64 = arith.constant 0 : index
    %c0_65 = arith.constant 0 : index
    %133 = vector.load %arg11[%c0_63, %c0_64, %c0_65] : memref<1x6x128xf32, #tpu.memory_space<vmem>>, vector<1x6x128xf32>
    %134 = vector.shape_cast %133 : vector<1x6x128xf32> to vector<6x128xf32>
    %135 = vector.shape_cast %132 : vector<6x128xf32> to vector<1x6x128xf32>
    tpu.vector_store %arg11[%c0_63, %c0_64, %c0_65], %135 {strides = array<i32>} : memref<1x6x128xf32, #tpu.memory_space<vmem>>, vector<1x6x128xf32>,
    return
  }
  func.func @transform_1(%arg0: i32, %arg1: i32) -> (i32, i32) {
    %c0_i32 = arith.constant 0 : i32
    %c0_i32_0 = arith.constant 0 : i32
    %c0_i32_1 = arith.constant 0 : i32
    return %c0_i32, %c0_i32_0 : i32, i32
  }
  func.func @transform_2(%arg0: i32, %arg1: i32) -> (i32, i32) {
    %c0_i32 = arith.constant 0 : i32
    %c0_i32_0 = arith.constant 0 : i32
    %c0_i32_1 = arith.constant 0 : i32
    return %c0_i32, %c0_i32_0 : i32, i32
  }
  func.func @transform_3(%arg0: i32, %arg1: i32) -> (i32, i32, i32) {
    %c0_i32 = arith.constant 0 : i32
    %c0_i32_0 = arith.constant 0 : i32
    %c0_i32_1 = arith.constant 0 : i32
    %c0_i32_2 = arith.constant 0 : i32
    return %c0_i32, %c0_i32_0, %c0_i32_1 : i32, i32, i32
  }
  func.func @transform_4(%arg0: i32, %arg1: i32) -> (i32, i32, i32) {
    %c0_i32 = arith.constant 0 : i32
    %c0_i32_0 = arith.constant 0 : i32
    %c0_i32_1 = arith.constant 0 : i32
    %c0_i32_2 = arith.constant 0 : i32
    return %c0_i32, %c0_i32_0, %c0_i32_1 : i32, i32, i32
  }
  func.func @transform_5(%arg0: i32, %arg1: i32) -> (i32, i32, i32) {
    %c0_i32 = arith.constant 0 : i32
    %c0_i32_0 = arith.constant 0 : i32
    %c0_i32_1 = arith.constant 0 : i32
    %c0_i32_2 = arith.constant 0 : i32
    return %c0_i32, %c0_i32_0, %c0_i32_1 : i32, i32, i32
  }
  func.func @transform_6(%arg0: i32, %arg1: i32) -> (i32, i32, i32) {
    %c0_i32 = arith.constant 0 : i32
    %c0_i32_0 = arith.constant 0 : i32
    %c0_i32_1 = arith.constant 0 : i32
    %c0_i32_2 = arith.constant 0 : i32
    return %c0_i32, %c0_i32_0, %c0_i32_1 : i32, i32, i32
  }
  func.func @transform_7(%arg0: i32, %arg1: i32) -> (i32, i32) {
    %c0_i32 = arith.constant 0 : i32
    %c0_i32_0 = arith.constant 0 : i32
    %c0_i32_1 = arith.constant 0 : i32
    return %c0_i32, %c0_i32_0 : i32, i32
  }
  func.func @transform_8(%arg0: i32, %arg1: i32) -> (i32, i32) {
    %c0_i32 = arith.constant 0 : i32
    %c0_i32_0 = arith.constant 0 : i32
    %c0_i32_1 = arith.constant 0 : i32
    return %c0_i32, %c0_i32_0 : i32, i32
  }
  func.func @transform_9(%arg0: i32, %arg1: i32) -> (i32, i32, i32) {
    %c0_i32 = arith.constant 0 : i32
    %c0_i32_0 = arith.constant 0 : i32
    return %arg0, %c0_i32, %arg1 : i32, i32, i32
  }
}

</mosaic_0001>

<bundles_post_ra>
// kernel: tpu_custom_call.1
= control target key start
LH: loop header
LB: loop body
LE: loop exit
PB: predicated region body
PF: predicated region fallthrough
CT: control target
= control target key end

     0   :  { %s2780_s30 = smov 0   ;;  %s2782_s10 = smov 0   ;;  %s3773_s0 = inlined_call_operand.vmem [shape: bf16[2,4,640], index: 0, kind: input, shape index: {}]   ;;  %s3774_s1 = inlined_call_operand.vmem [shape: bf16[32,4], index: 1, kind: input, shape index: {}]   ;;  %s3775_s2 = inlined_call_operand.vmem [shape: f32[32,1], index: 2, kind: input, shape index: {}]   ;;  %s3776_s3 = inlined_call_operand.vmem [shape: bf16[3,96,32], index: 3, kind: input, shape index: {}]   ;;  %s3777_s4 = inlined_call_operand.vmem [shape: f32[3,32,1], index: 4, kind: input, shape index: {}]   ;;  %s3778_s5 = inlined_call_operand.vmem [shape: bf16[3,32,32], index: 5, kind: input, shape index: {}]   ;;  %s3779_s6 = inlined_call_operand.vmem [shape: f32[3,32,1], index: 6, kind: input, shape index: {}]   ;;  %s3780_s7 = inlined_call_operand.vmem [shape: bf16[6,32], index: 7, kind: input, shape index: {}]   ;;  %s3781_s8 = inlined_call_operand.vmem [shape: f32[6,1], index: 8, kind: input, shape index: {}]   ;;  %s3782_s9 = inlined_call_operand.vmem [shape: f32[2,6,384], index: 9, kind: output, shape index: {}]  }
   0x1   :  { %s2784_s11 = smov 0   ;;  %s2786_s12 = smov 0  }
   0x2   :  { %s2788_s13 = smov 0  }
   0x3 LB: > { %s28_s14 = sadd.s32 1, %s2710_s11  ;;  %s31_s15 = sadd.s32 1, %s2714_s12  ;;  %s2718_s13 = sphi %s2788_s13, %s19_s13   ;;  %s2714_s12 = sphi %s2786_s12, %s3786_s12   ;;  %s2710_s11 = sphi %s2784_s11, %s3785_s11   ;;  %s2706_s10 = sphi %s2782_s10, %s3784_s10   ;;  %s2702_s30 = sphi %s2780_s30, %s3783_s30  }
   0x4   : > { %p29_p0 = scmp.ge.s32.totalorder %s28_s14, 3  ;;  %p2348_p1 = scmp.ge.s32.totalorder %s2718_s13, 1 }
   0x5   : > { %p267_p2 = scmp.lt.s32.totalorder %s2718_s13, 7 }
   0x6   : > { %s3788_s14 = smov (%p29_p0, %s28_s14), 0  ;;  %s3790_s15 = smov (!%p29_p0, %s31_s15), %s2714_s12 }
   0x7   : > { %p268_p3 = pnand %p2348_p1, %p267_p2  ;;  %p33_p4 = scmp.ge.s32.totalorder %s3790_s15, 2 }
   0x8   : > { %p299_p5 = scmp.lt.s32.totalorder (!%p268_p3), %s2706_s10, 1  ;;  %p301_p6 = scmp.lt.s32.totalorder (!%p268_p3), %s2702_s30, 2 }
   0x9   : > { %s3792_s15 = smov (%p33_p4, %s3790_s15), 0  ;;  %271 = sbr.rel (%p268_p3) target bundleno = 2248 (0x8c8), region = 52 }
   0xa   : > { %s2810_s16 = sshll.u32 (!%p268_p3), %s2702_s30, 7  ;;  %s311_s17 = smul.u32 (!%p268_p3), 5, %s2706_s10 }
   0xb   : > { %s309_s19 = sshra.s32 (!%p268_p3), %s2810_s16, 7 }
   0xc   : > { %s312_s20 = sadd.s32 (!%p268_p3), %s311_s17, %s309_s19 }
   0xd   : > { %s2351_s22 = sshll.u32 (!%p268_p3), %s312_s20, 1 }
   0xe   : > { %s3794_s10 = smov (!%p299_p5, %s2706_s10), 1  ;;  %s3796_s30 = smov (!%p301_p6, %s2702_s30), 2 }
   0xf   : > { %s2598_s18 = smul.u32 3, %s3794_s10  ;;  %s314_s26 = scalar_lea.vmem %s3773_s0, %s2351_s22 }
  0x10   : > { %v333_v0 = vld [vmem:[%s314_s26] sm:$0x3f] }
  0x11   : > { %s304_s21 = sadd.s32 %s2598_s18, %s3796_s30  ;;  %334 = vst [vmem:[#allocation2] sm:$0x3f] %v333_v0 }
  0x12   : > { %s2349_s23 = sshll.u32 %s304_s21, 3 }
  0x13   : > { %s2819_s29 = scalar_lea.vmem %s3782_s9, %s2349_s23 }
  0x14   : > { %360 = vsyncadd [#allocation3], 96 }
  0x15   : > { %2698 = dma.done.wait [#allocation3], 96 }
  0x16   : > { %2699 = vsyncadd [#allocation3], 4294967200  ;;  %v409_v1 = vlaneseq  ;;  %v2720_v2 = vmov 1983009808   ;;  %v2721_v4 = vmov 0   ;;  %vm428_vm0 = vcmask 1041408  }
  0x17   : > { %v407_v3 = vunpack.c.l.s4 %v2720_v2  ;;  %470 = vmatprep.mubr.bf16.mxu0 %v2721_v4  ;;  %2649 = vset.pattern.permute.xlu0 %v2721_v4  ;;  %vm421_vm1 = vcmask 31744   ;;  %v2652_v11 = vld [vmem:[%s3774_s1] sm:$0xff]   ;;  %v372_v12 = vld [vmem:[%s3775_s2 + $0x10] sm:$0xff]  ;;  %v2653_v17 = vld [vmem:[%s3774_s1 + $0x8] sm:$0xff]   ;;  %vm592_vm2 = vcmask 261120   ;;  %s2722_s19 = smov 1  }
  0x18   : > { %v410_v5 = vshrl.u32 %v409_v1, 7  ;;  %2650 = vset.pattern.permute.xlu1 %v2721_v4  ;;  %v365_v8 = vld [vmem:[#allocation2] sm:$0x3f]  ;;  %2521 = vmatprep.mubr.msk.bf16.mxu1 %vm421_vm1, %v2652_v11  ;;  %v373_v18 = vld [vmem:[%s3775_s2 + $0x18] sm:$0xff]  ;;  %v371_v20 = vld [vmem:[%s3775_s2 + $0x8] sm:$0xff]  ;;  %s2723_s20 = smov 127  }
  0x19   : > { %v408_v6 = vunpack.c.0.s8 %v407_v3  ;;  %v405_v10 = vcombine.high %v365_v8, %v365_v8  ;;  %v370_v13 = vld [vmem:[%s3775_s2] sm:$0xff]  ;;  %386 = vperm.xlu0 %2649, %v372_v12   ;;  %v919_v21 = vld [vmem:[%s3777_s4 + $0x10] sm:$0xff]  ;;  %v920_v22 = vld [vmem:[%s3777_s4 + $0x18] sm:$0xff]  ;;  %s785_s23 = ssub.s32 129, %s2810_s16  ;;  %s839_s24 = ssub.s32 427, %s2810_s16 }
  0x1a   : > { %376 = vperm.xlu1 %2650, %v370_v13   ;;  %v917_v23 = vld [vmem:[%s3777_s4] sm:$0xff]  ;;  %v918_v24 = vld [vmem:[%s3777_s4 + $0x8] sm:$0xff]  ;;  %v2656_v50 = vld [vmem:[%s3776_s3 + $0x10] sm:$0xff]   ;;  %s2724_s27 = smov 2   ;;  %s2725_s28 = smov 126  }
  0x1b   : > { %v411_v7 = vsub.s32 %v408_v6, %v410_v5  ;;  %v2654_v25 = vld [vmem:[%s3776_s3] sm:$0xff]   ;;  %v2655_v47 = vld [vmem:[%s3776_s3 + $0x8] sm:$0xff]   ;;  %v2657_v61 = vld [vmem:[%s3776_s3 + $0x18] sm:$0xff]   ;;  %s1370_s17 = ssub.s32 130, %s2810_s16  ;;  %s1424_s18 = ssub.s32 426, %s2810_s16 }
  0x1c   : > { %v2658_v63 = vld [vmem:[%s3776_s3 + $0x20] sm:$0xff]   ;;  %v2659_v0 = vld [vmem:[%s3776_s3 + $0x28] sm:$0xff]   ;;  %s2726_s21 = smov 4   ;;  %s2727_s22 = smov 124  }
  0x1d   : > { %v412_v9 = vrot.slane %v365_v8, %v411_v7  ;;  %v419_v16 = vrot.slane %v405_v10, %v411_v7  ;;  %391 = vperm.xlu0 %2649, %v373_v18  }
  0x1e   : > { %381 = vperm.xlu1 %2650, %v371_v20  }
  0x1f   : > { %v420_v14 = vcombine.high %v412_v9, %v412_v9  ;;  %v430_v15 = vsel %vm428_vm0, %v412_v9, 0  ;;  %2597 = vmatprep.subr.msk.bf16.mxu1 %vm428_vm0, %v419_v16  ;;  %v436_v19 = vsel %vm428_vm0, %v419_v16, 0 }
  0x20   : > { %2520 = vmatpush3.bf16.msra.mxu1 %v436_v19 }
  0x21   : > { %2354 = vmatprep.subr.msk.bf16.mxu0 %vm428_vm0, %v420_v14  ;;  %933 = vperm.xlu0 %2649, %v919_v21  }
  0x22   : > { %453 = vmatpush1.bf16.msra.mxu0 %v430_v15  ;;  %938 = vperm.xlu1 %2650, %v920_v22  }
  0x23   : > { %2522 = vmatmul.mubr.msk.bf16.vlgmr.msra.gmra.mxu1 %vm421_vm1, %v2653_v17 }
  0x24   : > { %643 = vmatprep.mubr.bf16.mxu1 %v2721_v4 }
  0x25   : > { %2355 = vmatmul.mubr.msk.bf16.vlgmr.msra.gmra.mxu0 %vm421_vm1, %v2652_v11  ;;  %923 = vperm.xlu0 %2649, %v917_v23  }
  0x26   : > { %480 = vmatprep.mubr.bf16.mxu0 %v2721_v4  ;;  %928 = vperm.xlu1 %2650, %v918_v24  }
  0x2d   : > { %2356 = vmatmul.mubr.msk.bf16.gmra.mxu0 %vm421_vm1, %v2653_v17 }
  0x2e   : > { %2529 = vmatprep.mubr.msk.bf16.mxu0 %vm592_vm2, %v2654_v25 }
  0x94   : > { %v387_v26 = vpop.permute.xlu0 %386 }
  0x95   : > { %v377_v27 = vpop.permute.xlu1 %376 }
  0x98   : > { %v392_v32 = vpop.permute.xlu0 %391 }
  0x99   : > { %v382_v36 = vpop.permute.xlu1 %381 }
  0xe3   : > { %v2523_v29 = vpop.f32.mrf.mxu1 }
  0xe4   : > { %v2869_v33 = vadd.f32 %v2523_v29, %v387_v26 }
  0xe5   : > { %v472_v28 = vpop.f32.mrf.mxu0  ;;  %v525_v31 = vpop.f32.mrf.mxu1 }
  0xe6   : > { %v2871_v37 = vadd.f32 %v525_v31, %v377_v27  ;;  %v2909_v60 = vadd.f32 %v472_v28, %v377_v27 }
  0xe7   : > { %v474_v30 = vpop.f32.mrf.mxu0  ;;  %v2524_v35 = vpop.f32.mrf.mxu1 }
  0xe8   : > { %v2873_v38 = vadd.f32 %v2524_v35, %v392_v32  ;;  %v2897_v55 = vadd.f32 %v474_v30, %v377_v27 }
  0xe9   : > { %v476_v34 = vpop.f32.mrf.mxu0  ;;  %v528_v40 = vpop.f32.mrf.mxu1 }
  0xea   : > { %v561_v41 = vpack.c.bf16 %v2873_v38, %v2869_v33  ;;  %v2877_v42 = vadd.f32 %v528_v40, %v382_v36  ;;  %v2902_v57 = vadd.f32 %v476_v34, %v382_v36 }
  0xeb   : > { %v478_v39 = vpop.f32.mrf.mxu0 }
  0xec   : > { %v558_v44 = vpack.c.bf16 %v2877_v42, %v2871_v37  ;;  %2525 = vmatprep.subr.bf16.mxu0 %v561_v41  ;;  %v2889_v51 = vadd.f32 %v478_v39, %v382_v36  ;;  %v556_v62 = vpack.c.bf16 %v2902_v57, %v2909_v60 }
  0xed   : > { %v482_v43 = vpop.f32.mrf.mxu0  ;;  %2526 = vmatpush3.bf16.msra.mxu0 %v561_v41 }
  0xee   : > { %2527 = vmatprep.subr.bf16.mxu0 %v558_v44  ;;  %v2895_v54 = vadd.f32 %v482_v43, %v387_v26  ;;  %v557_v59 = vpack.c.bf16 %v2889_v51, %v2897_v55  ;;  %v977_v43 = vld [vmem:[%s3779_s6 + $0x10] sm:$0xff] }
  0xef   : > { %v484_v45 = vpop.f32.mrf.mxu0 }
  0xf0   : > { %v2891_v52 = vadd.f32 %v484_v45, %v387_v26  ;;  %v978_v45 = vld [vmem:[%s3779_s6 + $0x18] sm:$0xff] }
  0xf1   : > { %v486_v46 = vpop.f32.mrf.mxu0  ;;  %2528 = vmatpush3.bf16.msra.mxu0 %v558_v44  ;;  %v975_v44 = vld [vmem:[%s3779_s6] sm:$0xff] }
  0xf2   : > { %v2884_v48 = vadd.f32 %v486_v46, %v392_v32  ;;  %v2415_v46 = vld [vmem:[%s3777_s4 + $0x30] sm:$0xff] }
  0xf3   : > { %v488_v49 = vpop.f32.mrf.mxu0 }
  0xf4   : > { %v2893_v53 = vadd.f32 %v488_v49, %v392_v32  ;;  %2530 = vmatmul.mubr.msk.bf16.vlgmr.msra.gmra.mxu0 %vm592_vm2, %v2655_v47  ;;  %v559_v58 = vpack.c.bf16 %v2884_v48, %v2895_v54  ;;  %v2413_v49 = vld [vmem:[%s3777_s4 + $0x20] sm:$0xff] }
  0xf5   : > { %2533 = vmatprep.mubr.msk.bf16.mxu0 %vm592_vm2, %v2656_v50 }
  0xf6   : > { %v560_v56 = vpack.c.bf16 %v2893_v53, %v2891_v52 }
  0xf8   : > { %623 = vmatprep.subr.bf16.mxu1 %v560_v56  ;;  %v2414_v56 = vld [vmem:[%s3777_s4 + $0x28] sm:$0xff] }
  0xf9   : > { %624 = vmatpush1.bf16.msra.mxu1 %v559_v58  ;;  %v3010_v58 = vpop.permute.xlu0 %933 }
  0xfa   : > { %625 = vmatprep.subr.bf16.mxu1 %v557_v59  ;;  %v3012_v59 = vpop.permute.xlu1 %938 }
  0xfc   : > { %2534 = vmatmul.mubr.msk.bf16.gmra.mxu0 %vm592_vm2, %v2657_v61 }
  0xfd   : > { %626 = vmatpush1.bf16.msra.mxu1 %v556_v62  ;;  %2537 = vmatprep.mubr.msk.bf16.mxu0 %vm592_vm2, %v2658_v63 }
  0xfe   : > { %v3016_v62 = vpop.permute.xlu1 %928 }
 0x100   : > { %2365 = vmatmul.mubr.msk.bf16.vlgmr.msra.gmra.mxu1 %vm592_vm2, %v2654_v25 }
 0x101   : > { %653 = vmatprep.mubr.bf16.mxu1 %v2721_v4 }
 0x104   : > { %2538 = vmatmul.mubr.msk.bf16.gmra.mxu0 %vm592_vm2, %v2659_v0 }
 0x105   : > { %1047 = vmatprep.mubr.bf16.mxu0 %v2721_v4 }
 0x108   : > { %2366 = vmatmul.mubr.msk.bf16.gmra.mxu1 %vm592_vm2, %v2655_v47  ;;  %v976_v47 = vld [vmem:[%s3779_s6 + $0x8] sm:$0xff] }
 0x109   : > { %663 = vmatprep.mubr.bf16.mxu1 %v2721_v4 }
 0x110   : > { %2367 = vmatmul.mubr.msk.bf16.gmra.mxu1 %vm592_vm2, %v2656_v50  ;;  %v2416_v50 = vld [vmem:[%s3777_s4 + $0x38] sm:$0xff] }
 0x111   : > { %673 = vmatprep.mubr.bf16.mxu1 %v2721_v4 }
 0x118   : > { %2368 = vmatmul.mubr.msk.bf16.gmra.mxu1 %vm592_vm2, %v2657_v61  ;;  %v3014_v61 = vpop.permute.xlu0 %923 }
 0x119   : > { %683 = vmatprep.mubr.bf16.mxu1 %v2721_v4 }
 0x120   : > { %2369 = vmatmul.mubr.msk.bf16.gmra.mxu1 %vm592_vm2, %v2658_v63 }
 0x121   : > { %693 = vmatprep.mubr.bf16.mxu1 %v2721_v4 }
 0x128   : > { %2370 = vmatmul.mubr.msk.bf16.gmra.mxu1 %vm592_vm2, %v2659_v0 }
 0x129   : > { %1228 = vmatprep.mubr.bf16.mxu1 %v2721_v4 }
 0x1b4   : > { %v2531_v2 = vpop.f32.mrf.mxu0 }
 0x1b5   : > { %810 = vrot.lane.b32.xlu0 %v2531_v2, %s2722_s19 }
 0x1b6   : > { %v738_v3 = vpop.f32.mrf.mxu0 }
 0x1b8   : > { %v2532_v5 = vpop.f32.mrf.mxu0 }
 0x1b9   : > { %806 = vrot.lane.b32.xlu0 %v738_v3, %s2722_s19  ;;  %812 = vrot.lane.b32.xlu1 %v2532_v5, %s2722_s19 }
 0x1ba   : > { %v741_v6 = vpop.f32.mrf.mxu0 }
 0x1bc   : > { %v2941_v7 = vpop.f32.mrf.mxu0 }
 0x1bd   : > { %808 = vrot.lane.b32.xlu1 %v741_v6, %s2722_s19 }
 0x1be   : > { %v2944_v9 = vpop.f32.mrf.mxu0 }
 0x1c0   : > { %v645_v8 = vpop.f32.mrf.mxu1  ;;  %v2947_v11 = vpop.f32.mrf.mxu0 }
 0x1c1   : > { %790 = vrot.lane.b32.xlu0 %v645_v8, %s2722_s19 }
 0x1c2   : > { %v647_v10 = vpop.f32.mrf.mxu1  ;;  %v2949_v13 = vpop.f32.mrf.mxu0 }
 0x1c4   : > { %v649_v12 = vpop.f32.mrf.mxu1  ;;  %v2539_v15 = vpop.f32.mrf.mxu0 }
 0x1c5   : > { %798 = vrot.lane.b32.xlu0 %v647_v10, %s2722_s19  ;;  %792 = vrot.lane.b32.xlu1 %v649_v12, %s2722_s19 }
 0x1c6   : > { %v651_v14 = vpop.f32.mrf.mxu1  ;;  %v770_v17 = vpop.f32.mrf.mxu0 }
 0x1c8   : > { %v655_v16 = vpop.f32.mrf.mxu1  ;;  %v2540_v19 = vpop.f32.mrf.mxu0 }
 0x1c9   : > { %800 = vrot.lane.b32.xlu1 %v651_v14, %s2722_s19  ;;  %864 = vrot.lane.b32.xlu0 %v2539_v15, %s2723_s20 }
 0x1ca   : > { %v657_v18 = vpop.f32.mrf.mxu1  ;;  %v773_v41 = vpop.f32.mrf.mxu0 }
 0x1cc   : > { %v659_v20 = vpop.f32.mrf.mxu1 }
 0x1cd   : > { %794 = vrot.lane.b32.xlu0 %v655_v16, %s2722_s19  ;;  %866 = vrot.lane.b32.xlu1 %v2540_v19, %s2723_s20  ;;  %v3021_v16 = vand.u32 127, %v409_v1  ;;  %v786_v19 = vstv %s785_s23 }
 0x1ce   : > { %v661_v21 = vpop.f32.mrf.mxu1 }
 0x1cf   : > { %vm814_vm3 = vcmp.lt.s32.totalorder %v3021_v16, 1  ;;  %vm787_vm4 = vcmp.ge.s32.totalorder %v3021_v16, %v786_v19  ;;  %vm868_vm7 = vcmp.lt.s32.totalorder %v3021_v16, 127  ;;  %vm1399_vm11 = vcmp.lt.s32.totalorder %v3021_v16, 2 }
 0x1d0   : > { %v2957_v22 = vpop.f32.mrf.mxu1  ;;  %vm1453_vm15 = vcmp.lt.s32.totalorder %v3021_v16, 126 }
 0x1d1   : > { %802 = vrot.lane.b32.xlu0 %v657_v18, %s2722_s19  ;;  %796 = vrot.lane.b32.xlu1 %v659_v20, %s2722_s19  ;;  %v3025_v18 = vadd.s32 128, %v3021_v16  ;;  %v3028_v20 = vadd.s32 256, %v3021_v16 }
 0x1d2   : > { %v2961_v23 = vpop.f32.mrf.mxu1 }
 0x1d3   : > { %vm788_vm5 = vcmp.ge.s32.totalorder %v3025_v18, %v786_v19  ;;  %vm789_vm6 = vcmp.ge.s32.totalorder %v3028_v20, %v786_v19 }
 0x1d4   : > { %v2963_v24 = vpop.f32.mrf.mxu1 }
 0x1d5   : > { %804 = vrot.lane.b32.xlu1 %v661_v21, %s2722_s19  ;;  %s1954_s19 = ssub.s32 132, %s2810_s16 }
 0x1d6   : > { %v2966_v25 = vpop.f32.mrf.mxu1 }
 0x1d8   : > { %v2968_v26 = vpop.f32.mrf.mxu1 }
 0x1da   : > { %v2970_v27 = vpop.f32.mrf.mxu1 }
 0x1dc   : > { %v2972_v28 = vpop.f32.mrf.mxu1 }
 0x1de   : > { %v2974_v29 = vpop.f32.mrf.mxu1 }
 0x1e0   : > { %v685_v30 = vpop.f32.mrf.mxu1 }
 0x1e2   : > { %v687_v31 = vpop.f32.mrf.mxu1 }
 0x1e3   : > { %852 = vrot.lane.b32.xlu0 %v687_v31, %s2723_s20 }
 0x1e4   : > { %v689_v32 = vpop.f32.mrf.mxu1 }
 0x1e6   : > { %v691_v34 = vpop.f32.mrf.mxu1 }
 0x1e7   : > { %854 = vrot.lane.b32.xlu1 %v691_v34, %s2723_s20 }
 0x1e8   : > { %v695_v35 = vpop.f32.mrf.mxu1 }
 0x1e9   : > { %848 = vrot.lane.b32.xlu0 %v695_v35, %s2723_s20 }
 0x1ea   : > { %v697_v36 = vpop.f32.mrf.mxu1 }
 0x1ec   : > { %v699_v39 = vpop.f32.mrf.mxu1 }
 0x1ed   : > { %856 = vrot.lane.b32.xlu0 %v697_v36, %s2723_s20  ;;  %850 = vrot.lane.b32.xlu1 %v699_v39, %s2723_s20  ;;  %v3045_v36 = vstv %s839_s24 }
 0x1ee   : > { %v701_v40 = vpop.f32.mrf.mxu1  ;;  %vm843_vm8 = vcmp.lt.s32.totalorder %v3028_v20, %v3045_v36  ;;  %vm841_vm9 = vcmp.lt.s32.totalorder %v3021_v16, %v3045_v36  ;;  %vm842_vm10 = vcmp.lt.s32.totalorder %v3025_v18, %v3045_v36 }
 0x1f1   : > { %860 = vrot.lane.b32.xlu0 %v770_v17, %s2723_s20  ;;  %858 = vrot.lane.b32.xlu1 %v701_v40, %s2723_s20 }
 0x1f5   : > { %844 = vrot.lane.b32.xlu0 %v685_v30, %s2723_s20  ;;  %862 = vrot.lane.b32.xlu1 %v773_v41, %s2723_s20 }
 0x1f9   : > { %991 = vperm.xlu0 %2649, %v977_v43   ;;  %846 = vrot.lane.b32.xlu1 %v689_v32, %s2723_s20  ;;  %s1999_s20 = ssub.s32 424, %s2810_s16 }
 0x1fd   : > { %981 = vperm.xlu0 %2649, %v975_v44   ;;  %996 = vperm.xlu1 %2650, %v978_v45  }
 0x201   : > { %1519 = vperm.xlu0 %2649, %v2415_v46   ;;  %986 = vperm.xlu1 %2650, %v976_v47  }
 0x205   : > { %1509 = vperm.xlu0 %2649, %v2413_v49   ;;  %1524 = vperm.xlu1 %2650, %v2416_v50  }
 0x209   : > { %1514 = vperm.xlu1 %2650, %v2414_v56  }
 0x227   : > { %v811_v63 = vpop.permute.xlu0 %810 }
 0x22b   : > { %v813_v0 = vpop.permute.xlu1 %812  ;;  %v807_v2 = vpop.permute.xlu0 %806 }
 0x22f   : > { %v809_v3 = vpop.permute.xlu1 %808 }
 0x233   : > { %v791_v5 = vpop.permute.xlu0 %790 }
 0x234   : > { %v823_v1 = vsel %vm814_vm3, %v807_v2, %v791_v5 }
 0x235   : > { %v827_v39 = vsel %vm787_vm4, %v823_v1, 0.0 }
 0x237   : > { %v793_v6 = vpop.permute.xlu1 %792  ;;  %v799_v8 = vpop.permute.xlu0 %798 }
 0x238   : > { %v815_v30 = vsel %vm814_vm3, %v799_v8, %v807_v2  ;;  %v819_v31 = vsel %vm814_vm3, %v791_v5, %v799_v8  ;;  %v824_v35 = vsel %vm814_vm3, %v809_v3, %v793_v6  ;;  %v893_v2 = vadd.f32 %v827_v39, %v2957_v22 }
 0x239   : > { %v828_v40 = vsel %vm788_vm5, %v819_v31, 0.0  ;;  %v829_v41 = vsel %vm789_vm6, %v815_v30, 0.0  ;;  %v830_v44 = vsel %vm787_vm4, %v824_v35, 0.0 }
 0x23a   : > { %v894_v5 = vadd.f32 %v828_v40, %v2961_v23  ;;  %v3077_v8 = vadd.f32 %v829_v41, %v2944_v9 }
 0x23b   : > { %v801_v10 = vpop.permute.xlu1 %800  ;;  %v865_v12 = vpop.permute.xlu0 %864 }
 0x23c   : > { %v820_v47 = vsel %vm814_vm3, %v793_v6, %v801_v10  ;;  %v3082_v6 = vadd.f32 %v830_v44, %v2963_v24 }
 0x23d   : > { %v831_v23 = vsel %vm788_vm5, %v820_v47, 0.0 }
 0x23e   : > { %v897_v47 = vadd.f32 %v831_v23, %v2966_v25 }
 0x23f   : > { %v3018_v14 = vpop.permute.xlu1 %866  ;;  %v795_v15 = vpop.permute.xlu0 %794 }
 0x240   : > { %v825_v49 = vsel %vm814_vm3, %v811_v63, %v795_v15 }
 0x241   : > { %v833_v9 = vsel %vm787_vm4, %v825_v49, 0.0 }
 0x242   : > { %v899_v41 = vadd.f32 %v833_v9, %v2968_v26 }
 0x243   : > { %v797_v17 = vpop.permute.xlu1 %796  ;;  %v803_v21 = vpop.permute.xlu0 %802 }
 0x244   : > { %v821_v43 = vsel %vm814_vm3, %v795_v15, %v803_v21  ;;  %v817_v50 = vsel %vm814_vm3, %v803_v21, %v811_v63  ;;  %v826_v56 = vsel %vm814_vm3, %v813_v0, %v797_v17  ;;  %v816_v15 = vsel %vm814_vm3, %v801_v10, %v809_v3 }
 0x245   : > { %v834_v1 = vsel %vm788_vm5, %v821_v43, 0.0  ;;  %v835_v21 = vsel %vm789_vm6, %v817_v50, 0.0  ;;  %v836_v24 = vsel %vm787_vm4, %v826_v56, 0.0  ;;  %v832_v40 = vsel %vm789_vm6, %v816_v15, 0.0 }
 0x246   : > { %v900_v10 = vadd.f32 %v834_v1, %v2970_v27  ;;  %v901_v49 = vadd.f32 %v2941_v7, %v835_v21  ;;  %v902_v50 = vadd.f32 %v836_v24, %v2972_v28  ;;  %v898_v9 = vadd.f32 %v832_v40, %v2949_v13 }
 0x247   : > { %v805_v32 = vpop.permute.xlu1 %804  ;;  %vm1982_vm4 = vcmp.lt.s32.totalorder %v3021_v16, 4 }
 0x248   : > { %v818_v63 = vsel %vm814_vm3, %v805_v32, %v813_v0  ;;  %v822_v22 = vsel %vm814_vm3, %v797_v17, %v805_v32 }
 0x249   : > { %v837_v32 = vsel %vm788_vm5, %v822_v22, 0.0  ;;  %v838_v35 = vsel %vm789_vm6, %v818_v63, 0.0 }
 0x24a   : > { %v903_v19 = vadd.f32 %v837_v32, %v2974_v29  ;;  %v904_v26 = vadd.f32 %v2947_v11, %v838_v35 }
 0x255   : > { %v3041_v34 = vpop.permute.xlu0 %852 }
 0x259   : > { %v3058_v45 = vpop.permute.xlu1 %854 }
 0x25b   : > { %v849_v46 = vpop.permute.xlu0 %848 }
 0x25c   : > { %v879_v43 = vsel %vm868_vm7, %v865_v12, %v849_v46 }
 0x25d   : > { %v889_v7 = vsel %vm843_vm8, %v879_v43, 0.0 }
 0x25f   : > { %v857_v30 = vpop.permute.xlu0 %856  ;;  %v851_v3 = vpop.permute.xlu1 %850 }
 0x260   : > { %v871_v0 = vsel %vm868_vm7, %v857_v30, %v865_v12  ;;  %v875_v17 = vsel %vm868_vm7, %v849_v46, %v857_v30  ;;  %v880_v31 = vsel %vm868_vm7, %v3018_v14, %v851_v3 }
 0x261   : > { %v887_v27 = vsel %vm841_vm9, %v875_v17, 0.0  ;;  %v888_v39 = vsel %vm842_vm10, %v871_v0, 0.0  ;;  %v892_v56 = vsel %vm843_vm8, %v880_v31, 0.0  ;;  %v913_v0 = vadd.f32 %v901_v49, %v889_v7 }
 0x262   : > { %v912_v44 = vadd.f32 %v900_v10, %v888_v39  ;;  %v911_v15 = vadd.f32 %v899_v41, %v887_v27  ;;  %v916_v46 = vadd.f32 %v904_v26, %v892_v56 }
 0x263   : > { %v861_v1 = vpop.permute.xlu0 %860  ;;  %v859_v63 = vpop.permute.xlu1 %858 }
 0x264   : > { %v869_v12 = vsel %vm868_vm7, %v3041_v34, %v861_v1  ;;  %v872_v28 = vsel %vm868_vm7, %v859_v63, %v3018_v14  ;;  %v876_v11 = vsel %vm868_vm7, %v851_v3, %v859_v63  ;;  %v948_v29 = vadd.f32 %v3010_v58, %v912_v44 }
 0x265   : > { %v882_v25 = vsel %vm842_vm10, %v869_v12, 0.0  ;;  %v890_v22 = vsel %vm841_vm9, %v876_v11, 0.0  ;;  %v891_v23 = vsel %vm842_vm10, %v872_v28, 0.0  ;;  %v947_v3 = vadd.f32 %v3010_v58, %v911_v15 }
 0x266   : > { %v906_v21 = vadd.f32 %v894_v5, %v882_v25  ;;  %v914_v24 = vadd.f32 %v902_v50, %v890_v22  ;;  %v915_v30 = vadd.f32 %v903_v19, %v891_v23  ;;  %v952_v27 = vadd.f32 %v3012_v59, %v916_v46 }
 0x267   : > { %v845_v14 = vpop.permute.xlu0 %844  ;;  %v863_v10 = vpop.permute.xlu1 %862  ;;  %v960_v40 = vmax.f32 %v948_v29, 0.0  ;;  %v959_v56 = vmax.f32 %v947_v3, 0.0  ;;  %v949_v25 = vadd.f32 %v3010_v58, %v913_v0  ;;  %v2662_v0 = vld [vmem:[%s3776_s3 + $0x30] sm:$0xff]  }
 0x268   : > { %v873_v17 = vsel %vm868_vm7, %v845_v14, %v3041_v34  ;;  %v870_v31 = vsel %vm868_vm7, %v3058_v45, %v863_v10  ;;  %v950_v32 = vadd.f32 %v3012_v59, %v914_v24  ;;  %v951_v13 = vadd.f32 %v3012_v59, %v915_v30 }
 0x269   : > { %v877_v5 = vsel %vm868_vm7, %v861_v1, %v845_v14  ;;  %v881_v35 = vsel %vm841_vm9, %v873_v17, 0.0  ;;  %v885_v34 = vsel %vm842_vm10, %v870_v31, 0.0  ;;  %v942_v41 = vadd.f32 %v3014_v61, %v906_v21 }
 0x26a   : > { %v905_v39 = vadd.f32 %v893_v2, %v881_v35  ;;  %v962_v43 = vmax.f32 %v950_v32, 0.0  ;;  %v909_v44 = vadd.f32 %v897_v47, %v885_v34  ;;  %v963_v50 = vmax.f32 %v951_v13, 0.0 }
 0x26b   : > { %v847_v49 = vpop.permute.xlu1 %846  ;;  %v883_v1 = vsel %vm843_vm8, %v877_v5, 0.0  ;;  %v954_v11 = vmax.f32 %v942_v41, 0.0  ;;  %v964_v23 = vmax.f32 %v952_v27, 0.0  ;;  %vm2729_vm10 = vmmov 0  }
 0x26c   : > { %v874_v59 = vsel %vm868_vm7, %v847_v49, %v3058_v45  ;;  %v878_v2 = vsel %vm868_vm7, %v863_v10, %v847_v49  ;;  %v945_v63 = vadd.f32 %v3016_v62, %v909_v44  ;;  %v973_v26 = vpack.c.bf16 %v963_v50, %v960_v40 }
 0x26d   : > { %v884_v47 = vsel %vm841_vm9, %v874_v59, 0.0  ;;  %v886_v19 = vsel %vm843_vm8, %v878_v2, 0.0  ;;  %v941_v15 = vadd.f32 %v3014_v61, %v905_v39  ;;  %v972_v45 = vpack.c.bf16 %v962_v43, %v959_v56 }
 0x26e   : > { %v908_v12 = vadd.f32 %v3082_v6, %v884_v47  ;;  %v910_v7 = vadd.f32 %v898_v9, %v886_v19  ;;  %v907_v28 = vadd.f32 %v3077_v8, %v883_v1  ;;  %1027 = vmatprep.subr.bf16.mxu0 %v973_v26  ;;  %v957_v29 = vmax.f32 %v945_v63, 0.0  ;;  %v2660_v8 = vld [vmem:[%s3778_s5] sm:$0xff]  }
 0x26f   : > { %1028 = vmatpush1.bf16.msra.mxu0 %v972_v45  ;;  %v953_v21 = vmax.f32 %v941_v15, 0.0  ;;  %v961_v9 = vmax.f32 %v949_v25, 0.0  ;;  %vm2027_vm7 = vcmp.lt.s32.totalorder %v3021_v16, 124 }
 0x270   : > { %v944_v46 = vadd.f32 %v3016_v62, %v908_v12  ;;  %v946_v36 = vadd.f32 %v3016_v62, %v910_v7  ;;  %v970_v22 = vpack.c.bf16 %v957_v29, %v954_v11  ;;  %v943_v6 = vadd.f32 %v3014_v61, %v907_v28  ;;  %v2661_v61 = vld [vmem:[%s3778_s5 + $0x8] sm:$0xff]  }
 0x271   : > { %v974_v58 = vpack.c.bf16 %v964_v23, %v961_v9 }
 0x272   : > { %v956_v24 = vmax.f32 %v944_v46, 0.0  ;;  %1029 = vmatprep.subr.bf16.mxu0 %v970_v22  ;;  %v958_v14 = vmax.f32 %v946_v36, 0.0  ;;  %v955_v10 = vmax.f32 %v943_v6, 0.0  ;;  %v2667_v6 = vld [vmem:[%s3776_s3 + $0x58] sm:$0xff]  }
 0x274   : > { %v969_v30 = vpack.c.bf16 %v956_v24, %v953_v21  ;;  %v971_v62 = vpack.c.bf16 %v958_v14, %v955_v10  ;;  %v992_v5 = vpop.permute.xlu0 %991  ;;  %v2666_v24 = vld [vmem:[%s3776_s3 + $0x50] sm:$0xff]  }
 0x276   : > { %1030 = vmatpush1.bf16.msra.mxu0 %v969_v30 }
 0x277   : > { %2541 = vmatprep.subr.bf16.mxu0 %v974_v58 }
 0x278   : > { %v997_v32 = vpop.permute.xlu1 %996  ;;  %v982_v44 = vpop.permute.xlu0 %981 }
 0x279   : > { %2379 = vmatmul.mubr.msk.bf16.vlgmr.msra.gmra.mxu0 %vm592_vm2, %v2660_v8 }
 0x27a   : > { %2542 = vmatpush3.bf16.msra.mxu0 %v974_v58  ;;  %1057 = vmatprep.mubr.bf16.mxu0 %v2721_v4 }
 0x27b   : > { %2543 = vmatprep.subr.bf16.mxu0 %v971_v62 }
 0x27c   : > { %v987_v39 = vpop.permute.xlu1 %986 }
 0x27e   : > { %2544 = vmatpush3.bf16.msra.mxu0 %v971_v62 }
 0x281   : > { %2380 = vmatmul.mubr.msk.bf16.gmra.mxu0 %vm592_vm2, %v2661_v61 }
 0x282   : > { %2545 = vmatprep.mubr.msk.bf16.mxu0 %vm592_vm2, %v2660_v8 }
 0x289   : > { %2546 = vmatmul.mubr.msk.bf16.vlgmr.msra.gmra.mxu0 %vm592_vm2, %v2661_v61 }
 0x28a   : > { %2553 = vmatprep.mubr.msk.bf16.mxu0 %vm592_vm2, %v2662_v0 }
 0x339   : > { %v1049_v3 = vpop.f32.mrf.mxu0 }
 0x33a   : > { %v1050_v15 = vadd.f32 %v1049_v3, %v982_v44 }
 0x33b   : > { %v1051_v17 = vpop.f32.mrf.mxu0 }
 0x33c   : > { %v1052_v56 = vadd.f32 %v1051_v17, %v982_v44 }
 0x33d   : > { %v1053_v31 = vpop.f32.mrf.mxu0 }
 0x33e   : > { %v1054_v59 = vadd.f32 %v1053_v31, %v987_v39  ;;  %v3223_v45 = vadd.f32 %v1052_v56, %v2897_v55  ;;  %v3235_v55 = vadd.f32 %v1050_v15, %v2909_v60 }
 0x33f   : > { %v1055_v13 = vpop.f32.mrf.mxu0 }
 0x340   : > { %v1056_v40 = vadd.f32 %v1055_v13, %v987_v39 }
 0x341   : > { %v1059_v35 = vpop.f32.mrf.mxu0 }
 0x342   : > { %v1060_v49 = vadd.f32 %v1059_v35, %v992_v5  ;;  %v3211_v47 = vadd.f32 %v1056_v40, %v2889_v51  ;;  %v3228_v51 = vadd.f32 %v1054_v59, %v2902_v57 }
 0x343   : > { %v1061_v27 = vpop.f32.mrf.mxu0 }
 0x344   : > { %v1062_v41 = vadd.f32 %v1061_v27, %v992_v5  ;;  %v3220_v12 = vadd.f32 %v1060_v49, %v2895_v54  ;;  %v1143_v54 = vpack.c.bf16 %v3211_v47, %v3223_v45  ;;  %v1142_v22 = vpack.c.bf16 %v3228_v51, %v3235_v55 }
 0x345   : > { %v1063_v34 = vpop.f32.mrf.mxu0 }
 0x346   : > { %v1064_v43 = vadd.f32 %v1063_v34, %v997_v32  ;;  %v3214_v19 = vadd.f32 %v1062_v41, %v2891_v52 }
 0x347   : > { %v1065_v50 = vpop.f32.mrf.mxu0 }
 0x348   : > { %v1066_v1 = vadd.f32 %v1065_v50, %v997_v32  ;;  %v3208_v2 = vadd.f32 %v1064_v43, %v2884_v48 }
 0x349   : > { %v2547_v63 = vpop.f32.mrf.mxu0 }
 0x34a   : > { %v3217_v26 = vadd.f32 %v1066_v1, %v2893_v53  ;;  %v1111_v48 = vadd.f32 %v2547_v63, %v992_v5  ;;  %v1145_v52 = vpack.c.bf16 %v3208_v2, %v3220_v12 }
 0x34b   : > { %v1102_v7 = vpop.f32.mrf.mxu0 }
 0x34c   : > { %v1146_v25 = vpack.c.bf16 %v3217_v26, %v3214_v19  ;;  %v1103_v28 = vadd.f32 %v1102_v7, %v982_v44  ;;  %v3238_v46 = vadd.f32 %v1111_v48, %v2869_v33 }
 0x34d   : > { %v2548_v53 = vpop.f32.mrf.mxu0 }
 0x34e   : > { %v1114_v11 = vadd.f32 %v2548_v53, %v997_v32  ;;  %1208 = vmatprep.subr.bf16.mxu1 %v1146_v25  ;;  %v3246_v23 = vadd.f32 %v1103_v28, %v2871_v37  ;;  %v2663_v37 = vld [vmem:[%s3776_s3 + $0x38] sm:$0xff]  }
 0x34f   : > { %v1105_v29 = vpop.f32.mrf.mxu0  ;;  %1209 = vmatpush1.bf16.msra.mxu1 %v1145_v52 }
 0x350   : > { %v3241_v57 = vadd.f32 %v1114_v11, %v2873_v38  ;;  %v1106_v36 = vadd.f32 %v1105_v29, %v987_v39  ;;  %1210 = vmatprep.subr.bf16.mxu1 %v1143_v54  ;;  %v2664_v38 = vld [vmem:[%s3776_s3 + $0x40] sm:$0xff]   ;;  %v2423_v11 = vld [vmem:[%s3779_s6 + $0x30] sm:$0xff]  ;;  %v2424_v29 = vld [vmem:[%s3779_s6 + $0x38] sm:$0xff] }
 0x351   : > { %v2421_v54 = vld [vmem:[%s3779_s6 + $0x20] sm:$0xff] }
 0x352   : > { %v3249_v21 = vadd.f32 %v1106_v36, %v2877_v42  ;;  %v1147_v60 = vpack.c.bf16 %v3241_v57, %v3238_v46  ;;  %v2665_v42 = vld [vmem:[%s3776_s3 + $0x48] sm:$0xff]   ;;  %v2463_v36 = vld [vmem:[%s3777_s4 + $0x50] sm:$0xff] }
 0x353   : > { %1211 = vmatpush1.bf16.msra.mxu1 %v1142_v22  ;;  %v2422_v22 = vld [vmem:[%s3779_s6 + $0x28] sm:$0xff] }
 0x354   : > { %2549 = vmatprep.subr.bf16.mxu0 %v1147_v60  ;;  %v1144_v33 = vpack.c.bf16 %v3249_v21, %v3246_v23 }
 0x355   : > { %2550 = vmatpush3.bf16.msra.mxu0 %v1147_v60  ;;  %v2461_v60 = vld [vmem:[%s3777_s4 + $0x40] sm:$0xff] }
 0x356   : > { %2401 = vmatmul.mubr.msk.bf16.vlgmr.msra.gmra.mxu1 %vm592_vm2, %v2662_v0  ;;  %2551 = vmatprep.subr.bf16.mxu0 %v1144_v33 }
 0x357   : > { %1238 = vmatprep.mubr.bf16.mxu1 %v2721_v4 }
 0x359   : > { %2552 = vmatpush3.bf16.msra.mxu0 %v1144_v33  ;;  %v2464_v33 = vld [vmem:[%s3777_s4 + $0x58] sm:$0xff] }
 0x35c   : > { %2554 = vmatmul.mubr.msk.bf16.vlgmr.msra.gmra.mxu0 %vm592_vm2, %v2663_v37 }
 0x35d   : > { %2557 = vmatprep.mubr.msk.bf16.mxu0 %vm592_vm2, %v2664_v38 }
 0x35e   : > { %2402 = vmatmul.mubr.msk.bf16.gmra.mxu1 %vm592_vm2, %v2663_v37  ;;  %v2462_v37 = vld [vmem:[%s3777_s4 + $0x48] sm:$0xff] }
 0x35f   : > { %1248 = vmatprep.mubr.bf16.mxu1 %v2721_v4 }
 0x364   : > { %2558 = vmatmul.mubr.msk.bf16.gmra.mxu0 %vm592_vm2, %v2665_v42 }
 0x365   : > { %2561 = vmatprep.mubr.msk.bf16.mxu0 %vm592_vm2, %v2666_v24 }
 0x366   : > { %2403 = vmatmul.mubr.msk.bf16.gmra.mxu1 %vm592_vm2, %v2664_v38  ;;  %v3348_v38 = vpop.permute.xlu0 %1519 }
 0x367   : > { %1258 = vmatprep.mubr.bf16.mxu1 %v2721_v4 }
 0x36c   : > { %2562 = vmatmul.mubr.msk.bf16.gmra.mxu0 %vm592_vm2, %v2667_v6 }
 0x36d   : > { %1635 = vmatprep.mubr.bf16.mxu0 %v2721_v4 }
 0x36e   : > { %2404 = vmatmul.mubr.msk.bf16.gmra.mxu1 %vm592_vm2, %v2665_v42  ;;  %v3350_v42 = vpop.permute.xlu1 %1524 }
 0x36f   : > { %1268 = vmatprep.mubr.bf16.mxu1 %v2721_v4 }
 0x376   : > { %2405 = vmatmul.mubr.msk.bf16.gmra.mxu1 %vm592_vm2, %v2666_v24  ;;  %v3352_v24 = vpop.permute.xlu0 %1509 }
 0x377   : > { %1278 = vmatprep.mubr.bf16.mxu1 %v2721_v4 }
 0x37e   : > { %2406 = vmatmul.mubr.msk.bf16.gmra.mxu1 %vm592_vm2, %v2667_v6  ;;  %v3354_v6 = vpop.permute.xlu1 %1514 }
 0x37f   : > { %1816 = vmatprep.mubr.bf16.mxu1 %v2721_v4 }
 0x416   : > { %v1230_v9 = vpop.f32.mrf.mxu1 }
 0x417   : > { %1375 = vrot.lane.b32.xlu0 %v1230_v9, %s2724_s27 }
 0x418   : > { %v1232_v30 = vpop.f32.mrf.mxu1 }
 0x41a   : > { %v1234_v58 = vpop.f32.mrf.mxu1 }
 0x41b   : > { %1383 = vrot.lane.b32.xlu0 %v1232_v30, %s2724_s27  ;;  %1377 = vrot.lane.b32.xlu1 %v1234_v58, %s2724_s27 }
 0x41c   : > { %v1236_v8 = vpop.f32.mrf.mxu1  ;;  %v2555_v14 = vpop.f32.mrf.mxu0 }
 0x41e   : > { %v1240_v10 = vpop.f32.mrf.mxu1  ;;  %v1323_v62 = vpop.f32.mrf.mxu0 }
 0x41f   : > { %1395 = vrot.lane.b32.xlu0 %v2555_v14, %s2724_s27  ;;  %1385 = vrot.lane.b32.xlu1 %v1236_v8, %s2724_s27 }
 0x420   : > { %v1242_v61 = vpop.f32.mrf.mxu1  ;;  %v2556_v0 = vpop.f32.mrf.mxu0 }
 0x422   : > { %v1244_v3 = vpop.f32.mrf.mxu1  ;;  %v1326_v17 = vpop.f32.mrf.mxu0 }
 0x423   : > { %1397 = vrot.lane.b32.xlu1 %v2556_v0, %s2724_s27  ;;  %1379 = vrot.lane.b32.xlu0 %v1240_v10, %s2724_s27 }
 0x424   : > { %v1246_v31 = vpop.f32.mrf.mxu1  ;;  %v3295_v32 = vpop.f32.mrf.mxu0 }
 0x426   : > { %v3297_v13 = vpop.f32.mrf.mxu1  ;;  %v3299_v5 = vpop.f32.mrf.mxu0 }
 0x427   : > { %1391 = vrot.lane.b32.xlu0 %v1323_v62, %s2724_s27  ;;  %1381 = vrot.lane.b32.xlu1 %v1244_v3, %s2724_s27 }
 0x428   : > { %v3303_v35 = vpop.f32.mrf.mxu1  ;;  %v3305_v27 = vpop.f32.mrf.mxu0 }
 0x42a   : > { %v3307_v39 = vpop.f32.mrf.mxu1  ;;  %v3309_v34 = vpop.f32.mrf.mxu0 }
 0x42b   : > { %1387 = vrot.lane.b32.xlu0 %v1242_v61, %s2724_s27  ;;  %1393 = vrot.lane.b32.xlu1 %v1326_v17, %s2724_s27 }
 0x42c   : > { %v3313_v40 = vpop.f32.mrf.mxu1  ;;  %v2563_v41 = vpop.f32.mrf.mxu0 }
 0x42e   : > { %v3315_v43 = vpop.f32.mrf.mxu1  ;;  %v1355_v44 = vpop.f32.mrf.mxu0 }
 0x42f   : > { %1389 = vrot.lane.b32.xlu1 %v1246_v31, %s2724_s27  ;;  %1449 = vrot.lane.b32.xlu0 %v2563_v41, %s2725_s28  ;;  %v1371_v41 = vstv %s1370_s17 }
 0x430   : > { %v3318_v49 = vpop.f32.mrf.mxu1  ;;  %v2564_v56 = vpop.f32.mrf.mxu0  ;;  %vm1373_vm12 = vcmp.ge.s32.totalorder %v3025_v18, %v1371_v41  ;;  %vm1372_vm13 = vcmp.ge.s32.totalorder %v3021_v16, %v1371_v41  ;;  %vm1374_vm14 = vcmp.ge.s32.totalorder %v3028_v20, %v1371_v41 }
 0x432   : > { %v3320_v50 = vpop.f32.mrf.mxu1  ;;  %v1358_v28 = vpop.f32.mrf.mxu0 }
 0x433   : > { %1451 = vrot.lane.b32.xlu1 %v2564_v56, %s2725_s28 }
 0x434   : > { %v3322_v1 = vpop.f32.mrf.mxu1 }
 0x436   : > { %v1270_v59 = vpop.f32.mrf.mxu1 }
 0x438   : > { %v1272_v63 = vpop.f32.mrf.mxu1 }
 0x439   : > { %1437 = vrot.lane.b32.xlu0 %v1272_v63, %s2725_s28 }
 0x43a   : > { %v1274_v15 = vpop.f32.mrf.mxu1 }
 0x43c   : > { %v1276_v7 = vpop.f32.mrf.mxu1 }
 0x43d   : > { %1439 = vrot.lane.b32.xlu1 %v1276_v7, %s2725_s28 }
 0x43e   : > { %v1280_v48 = vpop.f32.mrf.mxu1 }
 0x43f   : > { %1433 = vrot.lane.b32.xlu0 %v1280_v48, %s2725_s28  ;;  %v3369_v48 = vstv %s1424_s18 }
 0x440   : > { %v1282_v25 = vpop.f32.mrf.mxu1  ;;  %vm1428_vm0 = vcmp.lt.s32.totalorder %v3028_v20, %v3369_v48  ;;  %vm1426_vm1 = vcmp.lt.s32.totalorder %v3021_v16, %v3369_v48  ;;  %vm1427_vm3 = vcmp.lt.s32.totalorder %v3025_v18, %v3369_v48 }
 0x442   : > { %v1284_v52 = vpop.f32.mrf.mxu1 }
 0x443   : > { %1441 = vrot.lane.b32.xlu0 %v1282_v25, %s2725_s28  ;;  %1435 = vrot.lane.b32.xlu1 %v1284_v52, %s2725_s28 }
 0x444   : > { %v1286_v53 = vpop.f32.mrf.mxu1 }
 0x447   : > { %1445 = vrot.lane.b32.xlu0 %v1355_v44, %s2725_s28  ;;  %1443 = vrot.lane.b32.xlu1 %v1286_v53, %s2725_s28 }
 0x44b   : > { %1429 = vrot.lane.b32.xlu0 %v1270_v59, %s2725_s28  ;;  %1447 = vrot.lane.b32.xlu1 %v1358_v28, %s2725_s28 }
 0x44f   : > { %1579 = vperm.xlu0 %2649, %v2423_v11   ;;  %1431 = vrot.lane.b32.xlu1 %v1274_v15, %s2725_s28 }
 0x453   : > { %1569 = vperm.xlu0 %2649, %v2421_v54   ;;  %1584 = vperm.xlu1 %2650, %v2424_v29  }
 0x457   : > { %2077 = vperm.xlu0 %2649, %v2463_v36   ;;  %1574 = vperm.xlu1 %2650, %v2422_v22  }
 0x45b   : > { %2067 = vperm.xlu0 %2649, %v2461_v60   ;;  %2082 = vperm.xlu1 %2650, %v2464_v33  }
 0x45f   : > { %2072 = vperm.xlu1 %2650, %v2462_v37  }
 0x489   : > { %v1376_v9 = vpop.permute.xlu0 %1375 }
 0x48d   : > { %v1384_v30 = vpop.permute.xlu0 %1383  ;;  %v1378_v58 = vpop.permute.xlu1 %1377 }
 0x48e   : > { %v1404_v56 = vsel %vm1399_vm11, %v1376_v9, %v1384_v30 }
 0x48f   : > { %v1413_v52 = vsel %vm1373_vm12, %v1404_v56, 0.0 }
 0x491   : > { %v1396_v8 = vpop.permute.xlu0 %1395  ;;  %v1386_v14 = vpop.permute.xlu1 %1385 }
 0x492   : > { %v1405_v59 = vsel %vm1399_vm11, %v1378_v58, %v1386_v14 }
 0x493   : > { %v1416_v53 = vsel %vm1373_vm12, %v1405_v59, 0.0 }
 0x495   : > { %v1380_v10 = vpop.permute.xlu0 %1379  ;;  %v1398_v62 = vpop.permute.xlu1 %1397 }
 0x496   : > { %v1410_v63 = vsel %vm1399_vm11, %v1396_v8, %v1380_v10 }
 0x497   : > { %v1418_v28 = vsel %vm1372_vm13, %v1410_v63, 0.0 }
 0x499   : > { %v1392_v61 = vpop.permute.xlu0 %1391  ;;  %v1382_v0 = vpop.permute.xlu1 %1381 }
 0x49a   : > { %v1408_v25 = vsel %vm1399_vm11, %v1392_v61, %v1376_v9  ;;  %v1400_v54 = vsel %vm1399_vm11, %v1384_v30, %v1392_v61  ;;  %v1411_v29 = vsel %vm1399_vm11, %v1398_v62, %v1382_v0  ;;  %v1479_v9 = vadd.f32 %v1413_v52, %v3303_v35 }
 0x49b   : > { %v1412_v60 = vsel %vm1372_vm13, %v1408_v25, 0.0  ;;  %v3403_v30 = vadd.f32 %v1416_v53, %v3313_v40  ;;  %v1414_v56 = vsel %vm1374_vm14, %v1400_v54, 0.0 }
 0x49c   : > { %v1478_v40 = vadd.f32 %v1412_v60, %v3297_v13  ;;  %v1480_v53 = vadd.f32 %v1414_v56, %v3299_v5 }
 0x49d   : > { %v1388_v3 = vpop.permute.xlu0 %1387  ;;  %v1394_v17 = vpop.permute.xlu1 %1393 }
 0x49e   : > { %v1406_v11 = vsel %vm1399_vm11, %v1380_v10, %v1388_v3  ;;  %v1402_v33 = vsel %vm1399_vm11, %v1388_v3, %v1396_v8  ;;  %v1409_v37 = vsel %vm1399_vm11, %v1394_v17, %v1378_v58  ;;  %v1484_v10 = vadd.f32 %v1418_v28, %v3315_v43 }
 0x49f   : > { %v1419_v61 = vsel %vm1373_vm12, %v1406_v11, 0.0  ;;  %v1421_v8 = vsel %vm1372_vm13, %v1411_v29, 0.0  ;;  %v1420_v43 = vsel %vm1374_vm14, %v1402_v33, 0.0  ;;  %v1401_v3 = vsel %vm1399_vm11, %v1386_v14, %v1394_v17 }
 0x4a0   : > { %v1415_v59 = vsel %vm1372_vm13, %v1409_v37, 0.0  ;;  %v1485_v52 = vadd.f32 %v1419_v61, %v3318_v49  ;;  %v1487_v28 = vadd.f32 %v1421_v8, %v3320_v50  ;;  %v1486_v29 = vadd.f32 %v3295_v32, %v1420_v43 }
 0x4a1   : > { %v1450_v31 = vpop.permute.xlu0 %1449  ;;  %v1390_v44 = vpop.permute.xlu1 %1389  ;;  %v1417_v60 = vsel %vm1374_vm14, %v1401_v3, 0.0  ;;  %v1481_v33 = vadd.f32 %v1415_v59, %v3307_v39 }
 0x4a2   : > { %v1403_v58 = vsel %vm1399_vm11, %v1390_v44, %v1398_v62  ;;  %v1407_v35 = vsel %vm1399_vm11, %v1382_v0, %v1390_v44 }
 0x4a3   : > { %v1422_v44 = vsel %vm1373_vm12, %v1407_v35, 0.0  ;;  %v1423_v14 = vsel %vm1374_vm14, %v1403_v58, 0.0  ;;  %v1483_v35 = vadd.f32 %v1417_v60, %v3309_v34 }
 0x4a4   : > { %v1488_v5 = vadd.f32 %v1422_v44, %v3322_v1  ;;  %v1489_v50 = vadd.f32 %v3305_v27, %v1423_v14 }
 0x4a5   : > { %v1452_v15 = vpop.permute.xlu1 %1451 }
 0x4ab   : > { %v3367_v7 = vpop.permute.xlu0 %1437 }
 0x4af   : > { %v3387_v36 = vpop.permute.xlu1 %1439 }
 0x4b1   : > { %v1434_v22 = vpop.permute.xlu0 %1433 }
 0x4b2   : > { %v1464_v11 = vsel %vm1453_vm15, %v1450_v31, %v1434_v22 }
 0x4b5   : > { %v1442_v63 = vpop.permute.xlu0 %1441  ;;  %v1436_v25 = vpop.permute.xlu1 %1435 }
 0x4b6   : > { %v1456_v62 = vsel %vm1453_vm15, %v1442_v63, %v1450_v31  ;;  %v1460_v0 = vsel %vm1453_vm15, %v1434_v22, %v1442_v63  ;;  %v1465_v13 = vsel %vm1453_vm15, %v1452_v15, %v1436_v25  ;;  %v1474_v31 = vsel %vm1428_vm0, %v1464_v11, 0.0 }
 0x4b7   : > { %v1472_v17 = vsel %vm1426_vm1, %v1460_v0, 0.0  ;;  %v1473_v49 = vsel %vm1427_vm3, %v1456_v62, 0.0  ;;  %v1477_v37 = vsel %vm1428_vm0, %v1465_v13, 0.0 }
 0x4b8   : > { %v1497_v54 = vadd.f32 %v1485_v52, %v1473_v49  ;;  %v1496_v56 = vadd.f32 %v1484_v10, %v1472_v17  ;;  %v1501_v22 = vadd.f32 %v1489_v50, %v1477_v37  ;;  %v1498_v52 = vadd.f32 %v1486_v29, %v1474_v31 }
 0x4b9   : > { %v1446_v61 = vpop.permute.xlu0 %1445  ;;  %v1444_v58 = vpop.permute.xlu1 %1443 }
 0x4ba   : > { %v1454_v32 = vsel %vm1453_vm15, %v3367_v7, %v1446_v61  ;;  %v1457_v41 = vsel %vm1453_vm15, %v1444_v58, %v1452_v15  ;;  %v1461_v1 = vsel %vm1453_vm15, %v1436_v25, %v1444_v58  ;;  %v1534_v27 = vadd.f32 %v3348_v38, %v1497_v54 }
 0x4bb   : > { %v1467_v39 = vsel %vm1427_vm3, %v1454_v32, 0.0  ;;  %v1475_v10 = vsel %vm1426_vm1, %v1461_v1, 0.0  ;;  %v1476_v8 = vsel %vm1427_vm3, %v1457_v41, 0.0  ;;  %v1533_v25 = vadd.f32 %v3348_v38, %v1496_v56 }
 0x4bc   : > { %v1491_v43 = vadd.f32 %v1479_v9, %v1467_v39  ;;  %v1499_v3 = vadd.f32 %v1487_v28, %v1475_v10  ;;  %v1500_v59 = vadd.f32 %v1488_v5, %v1476_v8  ;;  %v1538_v14 = vadd.f32 %v3350_v42, %v1501_v22 }
 0x4bd   : > { %v1430_v15 = vpop.permute.xlu0 %1429  ;;  %v1448_v63 = vpop.permute.xlu1 %1447  ;;  %v1546_v49 = vmax.f32 %v1534_v27, 0.0  ;;  %v1545_v37 = vmax.f32 %v1533_v25, 0.0 }
 0x4be   : > { %v1458_v62 = vsel %vm1453_vm15, %v1430_v15, %v3367_v7  ;;  %v1455_v0 = vsel %vm1453_vm15, %v3387_v36, %v1448_v63  ;;  %v1536_v13 = vadd.f32 %v3350_v42, %v1499_v3  ;;  %v1537_v34 = vadd.f32 %v3350_v42, %v1500_v59 }
 0x4bf   : > { %v1462_v9 = vsel %vm1453_vm15, %v1446_v61, %v1430_v15  ;;  %v1466_v44 = vsel %vm1426_vm1, %v1458_v62, 0.0  ;;  %v1470_v7 = vsel %vm1427_vm3, %v1455_v0, 0.0  ;;  %v1528_v28 = vadd.f32 %v3352_v24, %v1491_v43 }
 0x4c0   : > { %v1490_v17 = vadd.f32 %v1478_v40, %v1466_v44  ;;  %v1548_v11 = vmax.f32 %v1536_v13, 0.0  ;;  %v1494_v54 = vadd.f32 %v3403_v30, %v1470_v7  ;;  %v1549_v60 = vmax.f32 %v1537_v34, 0.0 }
 0x4c1   : > { %v1432_v29 = vpop.permute.xlu1 %1431  ;;  %v1468_v61 = vsel %vm1428_vm0, %v1462_v9, 0.0  ;;  %v1540_v1 = vmax.f32 %v1528_v28, 0.0  ;;  %v1550_v20 = vmax.f32 %v1538_v14, 0.0 }
 0x4c2   : > { %v1459_v42 = vsel %vm1453_vm15, %v1432_v29, %v3387_v36  ;;  %v1463_v40 = vsel %vm1453_vm15, %v1448_v63, %v1432_v29  ;;  %v1531_v58 = vadd.f32 %v3354_v6, %v1494_v54  ;;  %v1560_v50 = vpack.c.bf16 %v1549_v60, %v1546_v49  ;;  %v2670_v63 = vld [vmem:[%s3776_s3 + $0x60] sm:$0xff]  }
 0x4c3   : > { %v1469_v30 = vsel %vm1426_vm1, %v1459_v42, 0.0  ;;  %v1471_v5 = vsel %vm1428_vm0, %v1463_v40, 0.0  ;;  %v1527_v56 = vadd.f32 %v3352_v24, %v1490_v17  ;;  %v1559_v39 = vpack.c.bf16 %v1548_v11, %v1545_v37 }
 0x4c4   : > { %v1493_v32 = vadd.f32 %v1481_v33, %v1469_v30  ;;  %v1495_v31 = vadd.f32 %v1483_v35, %v1471_v5  ;;  %v1535_v36 = vadd.f32 %v3348_v38, %v1498_v52  ;;  %v1492_v41 = vadd.f32 %v1480_v53, %v1468_v61  ;;  %1615 = vmatprep.subr.bf16.mxu0 %v1560_v50  ;;  %v2668_v38 = vld [vmem:[%s3778_s5 + $0x10] sm:$0xff]  }
 0x4c5   : > { %v1543_v27 = vmax.f32 %v1531_v58, 0.0  ;;  %1616 = vmatpush1.bf16.msra.mxu0 %v1559_v39  ;;  %v1539_v48 = vmax.f32 %v1527_v56, 0.0 }
 0x4c6   : > { %v1530_v22 = vadd.f32 %v3354_v6, %v1493_v32  ;;  %v1532_v10 = vadd.f32 %v3354_v6, %v1495_v31  ;;  %v1529_v3 = vadd.f32 %v3352_v24, %v1492_v41  ;;  %v1547_v33 = vmax.f32 %v1535_v36, 0.0  ;;  %v2669_v24 = vld [vmem:[%s3778_s5 + $0x18] sm:$0xff]  }
 0x4c7   : > { %v1557_v8 = vpack.c.bf16 %v1543_v27, %v1540_v1 }
 0x4c8   : > { %v1542_v43 = vmax.f32 %v1530_v22, 0.0  ;;  %v1561_v59 = vpack.c.bf16 %v1550_v20, %v1547_v33  ;;  %v1544_v53 = vmax.f32 %v1532_v10, 0.0  ;;  %v1541_v15 = vmax.f32 %v1529_v3, 0.0 }
 0x4c9   : > { %1617 = vmatprep.subr.bf16.mxu0 %v1557_v8 }
 0x4ca   : > { %v1556_v35 = vpack.c.bf16 %v1542_v43, %v1539_v48  ;;  %v1558_v6 = vpack.c.bf16 %v1544_v53, %v1541_v15  ;;  %v1580_v34 = vpop.permute.xlu0 %1579 }
 0x4cc   : > { %1618 = vmatpush1.bf16.msra.mxu0 %v1556_v35 }
 0x4cd   : > { %2565 = vmatprep.subr.bf16.mxu0 %v1561_v59 }
 0x4ce   : > { %v1585_v0 = vpop.permute.xlu1 %1584  ;;  %v1570_v11 = vpop.permute.xlu0 %1569 }
 0x4cf   : > { %2427 = vmatmul.mubr.msk.bf16.vlgmr.msra.gmra.mxu0 %vm592_vm2, %v2668_v38 }
 0x4d0   : > { %2566 = vmatpush3.bf16.msra.mxu0 %v1561_v59  ;;  %1645 = vmatprep.mubr.bf16.mxu0 %v2721_v4 }
 0x4d1   : > { %2567 = vmatprep.subr.bf16.mxu0 %v1558_v6 }
 0x4d2   : > { %v1575_v14 = vpop.permute.xlu1 %1574 }
 0x4d4   : > { %2568 = vmatpush3.bf16.msra.mxu0 %v1558_v6 }
 0x4d7   : > { %2428 = vmatmul.mubr.msk.bf16.gmra.mxu0 %vm592_vm2, %v2669_v24 }
 0x4d8   : > { %2569 = vmatprep.mubr.msk.bf16.mxu0 %vm592_vm2, %v2668_v38 }
 0x4df   : > { %2570 = vmatmul.mubr.msk.bf16.vlgmr.msra.gmra.mxu0 %vm592_vm2, %v2669_v24 }
 0x4e0   : > { %2577 = vmatprep.mubr.msk.bf16.mxu0 %vm592_vm2, %v2670_v63 }
 0x58f   : > { %v1637_v52 = vpop.f32.mrf.mxu0 }
 0x590   : > { %v1638_v50 = vadd.f32 %v1637_v52, %v1570_v11 }
 0x591   : > { %v1639_v25 = vpop.f32.mrf.mxu0 }
 0x592   : > { %v1640_v60 = vadd.f32 %v1639_v25, %v1570_v11 }
 0x593   : > { %v1641_v62 = vpop.f32.mrf.mxu0 }
 0x594   : > { %v1642_v61 = vadd.f32 %v1641_v62, %v1575_v14  ;;  %v3541_v31 = vadd.f32 %v1640_v60, %v3223_v45 }
 0x595   : > { %v1643_v13 = vpop.f32.mrf.mxu0 }
 0x596   : > { %v1644_v7 = vadd.f32 %v1643_v13, %v1575_v14 }
 0x597   : > { %v1647_v9 = vpop.f32.mrf.mxu0 }
 0x598   : > { %v1648_v54 = vadd.f32 %v1647_v9, %v1580_v34  ;;  %v3531_v58 = vadd.f32 %v1644_v7, %v3211_v47  ;;  %v1708_v47 = vadd.f32 %v1642_v61, %v3228_v51 }
 0x599   : > { %v1649_v44 = vpop.f32.mrf.mxu0 }
 0x59a   : > { %v1650_v49 = vadd.f32 %v1649_v44, %v1580_v34  ;;  %v1711_v56 = vadd.f32 %v1648_v54, %v3220_v12  ;;  %v1705_v12 = vadd.f32 %v1638_v50, %v3235_v55  ;;  %v2671_v55 = vld [vmem:[%s3776_s3 + $0x68] sm:$0xff]  }
 0x59b   : > { %v1651_v17 = vpop.f32.mrf.mxu0 }
 0x59c   : > { %v1652_v28 = vadd.f32 %v1651_v17, %v1585_v0  ;;  %v3534_v30 = vadd.f32 %v1650_v49, %v3214_v19  ;;  %v1730_v8 = vpack.c.bf16 %v1708_v47, %v1705_v12  ;;  %v2471_v47 = vld [vmem:[%s3779_s6 + $0x50] sm:$0xff]  ;;  %v3630_v12 = vpop.permute.xlu1 %2082 }
 0x59d   : > { %v1653_v29 = vpop.f32.mrf.mxu0 }
 0x59e   : > { %v1654_v37 = vadd.f32 %v1653_v29, %v1585_v0  ;;  %v1714_v42 = vadd.f32 %v1652_v28, %v3208_v2 }
 0x59f   : > { %v2571_v40 = vpop.f32.mrf.mxu0 }
 0x5a0   : > { %v3537_v5 = vadd.f32 %v1654_v37, %v3217_v26  ;;  %v1699_v39 = vadd.f32 %v2571_v40, %v1580_v34  ;;  %v1733_v36 = vpack.c.bf16 %v1714_v42, %v1711_v56  ;;  %v1731_v26 = vpack.c.bf16 %v3531_v58, %v3541_v31 }
 0x5a1   : > { %v1690_v32 = vpop.f32.mrf.mxu0 }
 0x5a2   : > { %v1734_v2 = vpack.c.bf16 %v3537_v5, %v3534_v30  ;;  %v1691_v19 = vadd.f32 %v1690_v32, %v1570_v11  ;;  %v1713_v45 = vadd.f32 %v1699_v39, %v3238_v46  ;;  %v2672_v46 = vld [vmem:[%s3776_s3 + $0x70] sm:$0xff]  }
 0x5a3   : > { %v2572_v41 = vpop.f32.mrf.mxu0 }
 0x5a4   : > { %v1702_v1 = vadd.f32 %v2572_v41, %v1585_v0  ;;  %1796 = vmatprep.subr.bf16.mxu1 %v1734_v2  ;;  %v1707_v51 = vadd.f32 %v1691_v19, %v3246_v23  ;;  %v2674_v23 = vld [vmem:[%s3776_s3 + $0x80] sm:$0xff]   ;;  %v2472_v41 = vld [vmem:[%s3779_s6 + $0x58] sm:$0xff] }
 0x5a5   : > { %v1693_v27 = vpop.f32.mrf.mxu0  ;;  %1797 = vmatpush1.bf16.msra.mxu1 %v1733_v36  ;;  %v2469_v36 = vld [vmem:[%s3779_s6 + $0x40] sm:$0xff] }
 0x5a6   : > { %v1716_v22 = vadd.f32 %v1702_v1, %v3241_v57  ;;  %v1694_v10 = vadd.f32 %v1693_v27, %v1575_v14  ;;  %1798 = vmatprep.subr.bf16.mxu1 %v1731_v26  ;;  %v2673_v57 = vld [vmem:[%s3776_s3 + $0x78] sm:$0xff]   ;;  %v2207_v19 = vld [vmem:[%s3781_s8] sm:$0x3f]  ;;  %v2470_v1 = vld [vmem:[%s3779_s6 + $0x48] sm:$0xff]  ;;  %v3628_v26 = vpop.permute.xlu0 %2077 }
 0x5a8   : > { %v1710_v20 = vadd.f32 %v1694_v10, %v3249_v21  ;;  %v1735_v48 = vpack.c.bf16 %v1716_v22, %v1713_v45  ;;  %v2675_v21 = vld [vmem:[%s3776_s3 + $0x88] sm:$0xff]   ;;  %v3634_v45 = vpop.permute.xlu1 %2072 }
 0x5a9   : > { %1799 = vmatpush1.bf16.msra.mxu1 %v1730_v8 }
 0x5aa   : > { %2573 = vmatprep.subr.bf16.mxu0 %v1735_v48  ;;  %v1732_v43 = vpack.c.bf16 %v1710_v20, %v1707_v51  ;;  %v3632_v27 = vpop.permute.xlu0 %2067 }
 0x5ab   : > { %2574 = vmatpush3.bf16.msra.mxu0 %v1735_v48 }
 0x5ac   : > { %2449 = vmatmul.mubr.msk.bf16.vlgmr.msra.gmra.mxu1 %vm592_vm2, %v2670_v63  ;;  %2575 = vmatprep.subr.bf16.mxu0 %v1732_v43 }
 0x5ad   : > { %1826 = vmatprep.mubr.bf16.mxu1 %v2721_v4 }
 0x5af   : > { %2576 = vmatpush3.bf16.msra.mxu0 %v1732_v43 }
 0x5b2   : > { %2578 = vmatmul.mubr.msk.bf16.vlgmr.msra.gmra.mxu0 %vm592_vm2, %v2671_v55 }
 0x5b3   : > { %2581 = vmatprep.mubr.msk.bf16.mxu0 %vm592_vm2, %v2672_v46 }
 0x5b4   : > { %2450 = vmatmul.mubr.msk.bf16.gmra.mxu1 %vm592_vm2, %v2671_v55 }
 0x5b5   : > { %1836 = vmatprep.mubr.bf16.mxu1 %v2721_v4 }
 0x5ba   : > { %2582 = vmatmul.mubr.msk.bf16.gmra.mxu0 %vm592_vm2, %v2673_v57 }
 0x5bb   : > { %2585 = vmatprep.mubr.msk.bf16.mxu0 %vm592_vm2, %v2674_v23 }
 0x5bc   : > { %2451 = vmatmul.mubr.msk.bf16.gmra.mxu1 %vm592_vm2, %v2672_v46 }
 0x5bd   : > { %1846 = vmatprep.mubr.bf16.mxu1 %v2721_v4 }
 0x5c2   : > { %2586 = vmatmul.mubr.msk.bf16.gmra.mxu0 %vm592_vm2, %v2675_v21 }
 0x5c3   : > { %2183 = vmatprep.mubr.bf16.mxu0 %v2721_v4 }
 0x5c4   : > { %2452 = vmatmul.mubr.msk.bf16.gmra.mxu1 %vm592_vm2, %v2673_v57 }
 0x5c5   : > { %1856 = vmatprep.mubr.bf16.mxu1 %v2721_v4 }
 0x5cc   : > { %2453 = vmatmul.mubr.msk.bf16.gmra.mxu1 %vm592_vm2, %v2674_v23 }
 0x5cd   : > { %1866 = vmatprep.mubr.bf16.mxu1 %v2721_v4 }
 0x5d4   : > { %2454 = vmatmul.mubr.msk.bf16.gmra.mxu1 %vm592_vm2, %v2675_v21 }
 0x66c   : > { %v1818_v3 = vpop.f32.mrf.mxu1 }
 0x66d   : > { %1958 = vrot.lane.b32.xlu0 %v1818_v3, %s2726_s21 }
 0x66e   : > { %v1820_v33 = vpop.f32.mrf.mxu1 }
 0x670   : > { %v1822_v35 = vpop.f32.mrf.mxu1 }
 0x671   : > { %1966 = vrot.lane.b32.xlu0 %v1820_v33, %s2726_s21  ;;  %1960 = vrot.lane.b32.xlu1 %v1822_v35, %s2726_s21 }
 0x672   : > { %v1824_v59 = vpop.f32.mrf.mxu1  ;;  %v2579_v38 = vpop.f32.mrf.mxu0 }
 0x674   : > { %v1828_v53 = vpop.f32.mrf.mxu1  ;;  %v1911_v15 = vpop.f32.mrf.mxu0 }
 0x675   : > { %1978 = vrot.lane.b32.xlu0 %v2579_v38, %s2726_s21  ;;  %1968 = vrot.lane.b32.xlu1 %v1824_v59, %s2726_s21  ;;  %v1955_v59 = vstv %s1954_s19 }
 0x676   : > { %v1830_v6 = vpop.f32.mrf.mxu1  ;;  %v2580_v24 = vpop.f32.mrf.mxu0  ;;  %vm1956_vm5 = vcmp.ge.s32.totalorder %v3021_v16, %v1955_v59  ;;  %vm1957_vm6 = vcmp.ge.s32.totalorder %v3025_v18, %v1955_v59 }
 0x678   : > { %v1832_v63 = vpop.f32.mrf.mxu1  ;;  %v1914_v52 = vpop.f32.mrf.mxu0 }
 0x679   : > { %1980 = vrot.lane.b32.xlu1 %v2580_v24, %s2726_s21  ;;  %1962 = vrot.lane.b32.xlu0 %v1828_v53, %s2726_s21  ;;  %v3646_v24 = vstv %s1999_s20 }
 0x67a   : > { %v1834_v25 = vpop.f32.mrf.mxu1  ;;  %v2583_v62 = vpop.f32.mrf.mxu0  ;;  %vm2001_vm8 = vcmp.lt.s32.totalorder %v3021_v16, %v3646_v24  ;;  %vm2002_vm9 = vcmp.lt.s32.totalorder %v3025_v18, %v3646_v24  ;;  %v2676_v16 = vld [vmem:[%s3778_s5 + $0x20] sm:$0xff]  }
 0x67c   : > { %v3592_v0 = vpop.f32.mrf.mxu1  ;;  %v1927_v13 = vpop.f32.mrf.mxu0 }
 0x67d   : > { %1974 = vrot.lane.b32.xlu0 %v1911_v15, %s2726_s21  ;;  %1964 = vrot.lane.b32.xlu1 %v1832_v63, %s2726_s21 }
 0x67e   : > { %v3596_v34 = vpop.f32.mrf.mxu1  ;;  %v2584_v9 = vpop.f32.mrf.mxu0 }
 0x680   : > { %v3598_v44 = vpop.f32.mrf.mxu1  ;;  %v1929_v14 = vpop.f32.mrf.mxu0 }
 0x681   : > { %1970 = vrot.lane.b32.xlu0 %v1830_v6, %s2726_s21  ;;  %1976 = vrot.lane.b32.xlu1 %v1914_v52, %s2726_s21 }
 0x682   : > { %v3602_v17 = vpop.f32.mrf.mxu1  ;;  %v2587_v7 = vpop.f32.mrf.mxu0 }
 0x684   : > { %v3604_v49 = vpop.f32.mrf.mxu1  ;;  %v1939_v28 = vpop.f32.mrf.mxu0 }
 0x685   : > { %1972 = vrot.lane.b32.xlu1 %v1834_v25, %s2726_s21  ;;  %2023 = vrot.lane.b32.xlu0 %v2587_v7, %s2727_s22 }
 0x686   : > { %v3607_v11 = vpop.f32.mrf.mxu1  ;;  %v2588_v29 = vpop.f32.mrf.mxu0 }
 0x688   : > { %v3609_v54 = vpop.f32.mrf.mxu1  ;;  %v1942_v2 = vpop.f32.mrf.mxu0 }
 0x689   : > { %2025 = vrot.lane.b32.xlu1 %v2588_v29, %s2727_s22 }
 0x68a   : > { %v3611_v60 = vpop.f32.mrf.mxu1 }
 0x68c   : > { %v1858_v37 = vpop.f32.mrf.mxu1 }
 0x68e   : > { %v1860_v61 = vpop.f32.mrf.mxu1 }
 0x68f   : > { %2011 = vrot.lane.b32.xlu0 %v1860_v61, %s2727_s22 }
 0x690   : > { %v1862_v42 = vpop.f32.mrf.mxu1 }
 0x692   : > { %v1864_v40 = vpop.f32.mrf.mxu1 }
 0x693   : > { %2013 = vrot.lane.b32.xlu1 %v1864_v40, %s2727_s22 }
 0x694   : > { %v1868_v50 = vpop.f32.mrf.mxu1 }
 0x695   : > { %2007 = vrot.lane.b32.xlu0 %v1868_v50, %s2727_s22 }
 0x696   : > { %v1870_v56 = vpop.f32.mrf.mxu1 }
 0x698   : > { %v1872_v32 = vpop.f32.mrf.mxu1 }
 0x699   : > { %2015 = vrot.lane.b32.xlu0 %v1870_v56, %s2727_s22  ;;  %2009 = vrot.lane.b32.xlu1 %v1872_v32, %s2727_s22 }
 0x69a   : > { %v1874_v39 = vpop.f32.mrf.mxu1 }
 0x69d   : > { %2019 = vrot.lane.b32.xlu0 %v1939_v28, %s2727_s22  ;;  %2017 = vrot.lane.b32.xlu1 %v1874_v39, %s2727_s22 }
 0x6a1   : > { %2003 = vrot.lane.b32.xlu0 %v1858_v37, %s2727_s22  ;;  %2021 = vrot.lane.b32.xlu1 %v1942_v2, %s2727_s22 }
 0x6a5   : > { %2127 = vperm.xlu0 %2649, %v2471_v47   ;;  %2005 = vrot.lane.b32.xlu1 %v1862_v42, %s2727_s22 }
 0x6a9   : > { %2117 = vperm.xlu0 %2649, %v2469_v36   ;;  %2132 = vperm.xlu1 %2650, %v2472_v41  }
 0x6ad   : > { %2210 = vperm.xlu0 %2649, %v2207_v19   ;;  %2122 = vperm.xlu1 %2650, %v2470_v1  }
 0x6df   : > { %v1959_v22 = vpop.permute.xlu0 %1958 }
 0x6e3   : > { %v1967_v10 = vpop.permute.xlu0 %1966  ;;  %v1961_v8 = vpop.permute.xlu1 %1960 }
 0x6e4   : > { %v1983_v63 = vsel %vm1982_vm4, %v1959_v22, %v1967_v10 }
 0x6e5   : > { %v1992_v9 = vsel %vm1957_vm6, %v1983_v63, 0.0 }
 0x6e7   : > { %v1979_v51 = vpop.permute.xlu0 %1978  ;;  %v1969_v20 = vpop.permute.xlu1 %1968 }
 0x6e8   : > { %v1984_v14 = vsel %vm1982_vm4, %v1961_v8, %v1969_v20 }
 0x6e9   : > { %v1994_v47 = vsel %vm1957_vm6, %v1984_v14, 0.0 }
 0x6eb   : > { %v1963_v48 = vpop.permute.xlu0 %1962  ;;  %v1981_v43 = vpop.permute.xlu1 %1980 }
 0x6ec   : > { %v1989_v53 = vsel %vm1982_vm4, %v1979_v51, %v1963_v48 }
 0x6ed   : > { %v1995_v62 = vsel %vm1956_vm5, %v1989_v53, 0.0 }
 0x6ee   : > { %v2048_v50 = vadd.f32 %v1995_v62, %v3604_v49 }
 0x6ef   : > { %v1975_v55 = vpop.permute.xlu0 %1974  ;;  %v1965_v46 = vpop.permute.xlu1 %1964 }
 0x6f0   : > { %v1990_v52 = vsel %vm1982_vm4, %v1981_v43, %v1965_v46  ;;  %v1987_v7 = vsel %vm1982_vm4, %v1975_v55, %v1959_v22 }
 0x6f1   : > { %v1997_v37 = vsel %vm1956_vm5, %v1990_v52, 0.0  ;;  %v1991_v49 = vsel %vm1956_vm5, %v1987_v7, 0.0 }
 0x6f2   : > { %v2050_v36 = vadd.f32 %v1997_v37, %v3609_v54 }
 0x6f3   : > { %v1971_v57 = vpop.permute.xlu0 %1970  ;;  %v1977_v23 = vpop.permute.xlu1 %1976 }
 0x6f4   : > { %v1985_v38 = vsel %vm1982_vm4, %v1963_v48, %v1971_v57  ;;  %v1988_v22 = vsel %vm1982_vm4, %v1977_v23, %v1961_v8  ;;  %v2044_v57 = vadd.f32 %v1991_v49, %v3592_v0 }
 0x6f5   : > { %v1996_v25 = vsel %vm1957_vm6, %v1985_v38, 0.0  ;;  %v1993_v38 = vsel %vm1956_vm5, %v1988_v22, 0.0 }
 0x6f6   : > { %v2049_v61 = vadd.f32 %v1996_v25, %v3607_v11  ;;  %v2045_v11 = vadd.f32 %v1992_v9, %v3596_v34  ;;  %v2046_v7 = vadd.f32 %v1993_v38, %v3598_v44 }
 0x6f7   : > { %v2024_v21 = vpop.permute.xlu0 %2023  ;;  %v1973_v3 = vpop.permute.xlu1 %1972 }
 0x6f8   : > { %v1986_v13 = vsel %vm1982_vm4, %v1965_v46, %v1973_v3  ;;  %v2047_v46 = vadd.f32 %v1994_v47, %v3602_v17 }
 0x6f9   : > { %v1998_v56 = vsel %vm1957_vm6, %v1986_v13, 0.0 }
 0x6fa   : > { %v2051_v10 = vadd.f32 %v1998_v56, %v3611_v60 }
 0x6fb   : > { %v2026_v35 = vpop.permute.xlu1 %2025 }
 0x701   : > { %v2012_v33 = vpop.permute.xlu0 %2011 }
 0x705   : > { %v3644_v6 = vpop.permute.xlu1 %2013 }
 0x707   : > { %v2008_v15 = vpop.permute.xlu0 %2007 }
 0x70b   : > { %v2016_v28 = vpop.permute.xlu0 %2015  ;;  %v2010_v29 = vpop.permute.xlu1 %2009 }
 0x70c   : > { %v2030_v42 = vsel %vm2027_vm7, %v2016_v28, %v2024_v21  ;;  %v2034_v40 = vsel %vm2027_vm7, %v2008_v15, %v2016_v28 }
 0x70d   : > { %v2040_v32 = vsel %vm2001_vm8, %v2034_v40, 0.0  ;;  %v2041_v39 = vsel %vm2002_vm9, %v2030_v42, 0.0 }
 0x70e   : > { %v2057_v2 = vadd.f32 %v2049_v61, %v2041_v39  ;;  %v2056_v41 = vadd.f32 %v2048_v50, %v2040_v32 }
 0x70f   : > { %v2020_v19 = vpop.permute.xlu0 %2019  ;;  %v2018_v1 = vpop.permute.xlu1 %2017 }
 0x710   : > { %v2028_v34 = vsel %vm2027_vm7, %v2012_v33, %v2020_v19  ;;  %v2031_v51 = vsel %vm2027_vm7, %v2018_v1, %v2026_v35  ;;  %v2090_v20 = vadd.f32 %v3628_v26, %v2057_v2  ;;  %v2035_v48 = vsel %vm2027_vm7, %v2010_v29, %v2018_v1 }
 0x711   : > { %v2037_v54 = vsel %vm2002_vm9, %v2028_v34, 0.0  ;;  %v2043_v8 = vsel %vm2002_vm9, %v2031_v51, 0.0  ;;  %v2042_v43 = vsel %vm2001_vm8, %v2035_v48, 0.0  ;;  %v2089_v23 = vadd.f32 %v3628_v26, %v2056_v41 }
 0x712   : > { %v2053_v60 = vadd.f32 %v2045_v11, %v2037_v54  ;;  %v2059_v55 = vadd.f32 %v2051_v10, %v2043_v8  ;;  %v2058_v21 = vadd.f32 %v2050_v36, %v2042_v43  ;;  %v2098_v59 = vmax.f32 %v2090_v20, 0.0 }
 0x713   : > { %v2004_v3 = vpop.permute.xlu0 %2003  ;;  %v2022_v35 = vpop.permute.xlu1 %2021  ;;  %v2097_v13 = vmax.f32 %v2089_v23, 0.0 }
 0x714   : > { %v2092_v53 = vadd.f32 %v3630_v12, %v2059_v55  ;;  %v2032_v15 = vsel %vm2027_vm7, %v2004_v3, %v2012_v33  ;;  %v2029_v63 = vsel %vm2027_vm7, %v3644_v6, %v2022_v35  ;;  %v2091_v17 = vadd.f32 %v3630_v12, %v2058_v21 }
 0x715   : > { %v2036_v0 = vsel %vm2001_vm8, %v2032_v15, 0.0  ;;  %v2039_v26 = vsel %vm2002_vm9, %v2029_v63, 0.0  ;;  %v2086_v52 = vadd.f32 %v3632_v27, %v2053_v60 }
 0x716   : > { %v2052_v25 = vadd.f32 %v2044_v57, %v2036_v0  ;;  %v2055_v62 = vadd.f32 %v2047_v46, %v2039_v26  ;;  %v2100_v33 = vmax.f32 %v2092_v53, 0.0  ;;  %v2099_v9 = vmax.f32 %v2091_v17, 0.0  ;;  %v2206_v57 = vld [vmem:[%s3780_s7] sm:$0x7] }
 0x717   : > { %v2006_v14 = vpop.permute.xlu1 %2005  ;;  %v2094_v40 = vmax.f32 %v2086_v52, 0.0 }
 0x718   : > { %v2088_v12 = vadd.f32 %v3634_v45, %v2055_v62  ;;  %v2033_v28 = vsel %vm2027_vm7, %v2006_v14, %v3644_v6  ;;  %v2109_v29 = vpack.c.bf16 %v2100_v33, %v2098_v59  ;;  %v2108_v37 = vpack.c.bf16 %v2099_v9, %v2097_v13 }
 0x719   : > { %v2038_v18 = vsel %vm2001_vm8, %v2033_v28, 0.0  ;;  %v2085_v61 = vadd.f32 %v3632_v27, %v2052_v25  ;;  %v2677_v27 = vld [vmem:[%s3778_s5 + $0x28] sm:$0xff]  }
 0x71a   : > { %v2054_v42 = vadd.f32 %v2046_v7, %v2038_v18  ;;  %2163 = vmatprep.subr.bf16.mxu0 %v2109_v29  ;;  %v2096_v50 = vmax.f32 %v2088_v12, 0.0 }
 0x71b   : > { %2164 = vmatpush1.bf16.msra.mxu0 %v2108_v37  ;;  %v2093_v32 = vmax.f32 %v2085_v61, 0.0 }
 0x71c   : > { %v2087_v44 = vadd.f32 %v3634_v45, %v2054_v42  ;;  %v2107_v56 = vpack.c.bf16 %v2096_v50, %v2094_v40  ;;  %v2728_v45 = vmov 0.0  }
 0x71e   : > { %v2095_v39 = vmax.f32 %v2087_v44, 0.0  ;;  %2165 = vmatprep.subr.bf16.mxu0 %v2107_v56 }
 0x720   : > { %v2106_v6 = vpack.c.bf16 %v2095_v39, %v2093_v32  ;;  %v2128_v41 = vpop.permute.xlu0 %2127 }
 0x722   : > { %2166 = vmatpush1.bf16.msra.mxu0 %v2106_v6 }
 0x723   : > { %2589 = vmatprep.subr.bf16.mxu0 %v2728_v45 }
 0x724   : > { %v2133_v49 = vpop.permute.xlu1 %2132  ;;  %v2118_v20 = vpop.permute.xlu0 %2117 }
 0x725   : > { %2475 = vmatmul.mubr.msk.bf16.vlgmr.msra.gmra.mxu0 %vm592_vm2, %v2676_v16 }
 0x726   : > { %2191 = vmatprep.mubr.bf16.mxu0 %v2721_v4 }
 0x728   : > { %v2123_v22 = vpop.permute.xlu1 %2122  ;;  %v2211_v23 = vpop.permute.xlu0 %2210 }
 0x72d   : > { %2476 = vmatmul.mubr.msk.bf16.gmra.mxu0 %vm592_vm2, %v2677_v27 }
 0x72e   : > { %2593 = vmatprep.mubr.msk.bf16.mxu0 %vm2729_vm10, %v2728_v45 }
 0x7e5   : > { %v2185_v24 = vpop.f32.mrf.mxu0 }
 0x7e7   : > { %v2186_v11 = vpop.f32.mrf.mxu0 }
 0x7e8   : > { %v2187_v54 = vadd.f32 %v2186_v11, %v2118_v20 }
 0x7e9   : > { %v2188_v2 = vpop.f32.mrf.mxu0 }
 0x7ea   : > { %v2200_v55 = vadd.f32 %v2187_v54, %v3541_v31 }
 0x7eb   : > { %v2189_v47 = vpop.f32.mrf.mxu0 }
 0x7ec   : > { %v2190_v34 = vadd.f32 %v2189_v47, %v2123_v22 }
 0x7ed   : > { %v2193_v36 = vpop.f32.mrf.mxu0 }
 0x7ee   : > { %v2201_v60 = vadd.f32 %v2190_v34, %v3531_v58 }
 0x7ef   : > { %v2194_v19 = vpop.f32.mrf.mxu0 }
 0x7f0   : > { %v2195_v4 = vadd.f32 %v2194_v19, %v2128_v41  ;;  %v2204_v46 = vpack.c.bf16 %v2201_v60, %v2200_v55 }
 0x7f1   : > { %v2196_v1 = vpop.f32.mrf.mxu0 }
 0x7f2   : > { %v2202_v48 = vadd.f32 %v2195_v4, %v3534_v30 }
 0x7f3   : > { %v2197_v10 = vpop.f32.mrf.mxu0 }
 0x7f4   : > { %v2198_v51 = vadd.f32 %v2197_v10, %v2133_v49 }
 0x7f6   : > { %v2203_v8 = vadd.f32 %v2198_v51, %v3537_v5 }
 0x7f8   : > { %v2205_v43 = vpack.c.bf16 %v2203_v8, %v2202_v48 }
 0x7fa   : > { %2590 = vmatpush3.bf16.msra.mxu0 %v2205_v43 }
 0x7fb   : > { %2591 = vmatprep.subr.bf16.mxu0 %v2728_v45 }
 0x7fe   : > { %2592 = vmatpush3.bf16.msra.mxu0 %v2204_v46 }
 0x801   : > { %2594 = vmatmul.mubr.msk.bf16.vlgmr.msra.gmra.mxu0 %vm592_vm2, %v2206_v57 }
 0x8c1   : > { %v2250_v21 = vpop.f32.mrf.mxu0 }
 0x8c2   : > { %v2251_v30 = vadd.f32 %v2250_v21, %v2211_v23 }
 0x8c3   : > { %v2595_v3 = vpop.f32.mrf.mxu0 }
 0x8c4   : > { %2256 = vst [vmem:[%s2819_s29] sm:$0x3f] %v2251_v30 }
 0x8c5   : > { %v2253_v5 = vpop.f32.mrf.mxu0 }
 0x8c7   : > { %v2596_v58 = vpop.f32.mrf.mxu0 }
 0x8c8 PF: > { %s19_s13 = sadd.s32 1, %s2718_s13   ;;  %s3783_s30 = smov %s2710_s11 }
 0x8c9   : > { %p16_p7 = scmp.ge.s32.totalorder %s19_s13, 8   ;;  %s3784_s10 = smov %s2714_s12 }
 0x8ca   : > { %s3785_s11 = smov %s3788_s14  ;;  %s3786_s12 = smov %s3792_s15 }
 0x8cb   :  { %18 = sbr.rel (!%p16_p7) target bundleno = 3 (0x3), region = 128 }
 0x8d0   :  { %2284 = vsyncmov [#allocation3] }
 0x8d3   :  { %s2285_s29 = vpop.sfrf %2284 }
 0x8d4   :  { %p2480_p8 = scmp.ne.s32.totalorder %s2285_s29, 0 }
 0x8d6   :  { %2289 = shalt.err (%p2480_p8)  }

</bundles_post_ra>
